<compile_context>
chip_gen: v7x
topology: tpu7x:2x2x1
jax: 0.10.0
libtpu: 0.0.40
codegen_flags: <defaults>
</compile_context>

<pallas_src>
import numpy as np
import jax
import jax.numpy as jnp
from jax import lax
from jax.experimental import pallas as pl
from jax.experimental.pallas import tpu as pltpu


# ------------------------------ fused kernel ------------------------------
def _make_fused_kernel(num_layers, T, B, H):
    """Builds a kernel: refs = (x, h0, c0, [w_ih_t, w_hh_t, b] * L, w_out, b_out,
                                out, hN, cN, xp_scr, y_scr)."""

    def kernel(*refs):
        x_ref, h0_ref, c0_ref = refs[0], refs[1], refs[2]
        p = 3
        layer_refs = []
        for _ in range(num_layers):
            layer_refs.append((refs[p], refs[p + 1], refs[p + 2]))
            p += 3
        w_out_ref, b_out_ref = refs[p], refs[p + 1]
        p += 2
        out_ref, hN_ref, cN_ref = refs[p], refs[p + 1], refs[p + 2]
        xp_scr, y_scr = refs[p + 3], refs[p + 4]

        for l, (w_ih_ref, w_hh_ref, b_ref) in enumerate(layer_refs):
            # ---- input projection for the whole sequence (off the recurrence) ----
            if l == 0:
                D_in = x_ref.shape[-1]
                x2d = x_ref[...].reshape(T * B, D_in)
            else:
                x2d = y_scr[...].reshape(T * B, H)  # previous layer's outputs
            xp = jnp.dot(x2d, w_ih_ref[...],
                         preferred_element_type=jnp.float32) + b_ref[...]
            xp_scr[...] = xp.reshape(T, B, 4 * H)

            w_hh = w_hh_ref[...]          # (H, 4H), resident in vregs/VMEM
            h0 = h0_ref[l]                # (B, H)
            c0 = c0_ref[l]

            def body(t, carry, _w_hh=w_hh):
                h, c = carry
                # only the recurrent matmul sits on the serial chain
                gates = xp_scr[t] + jnp.dot(h, _w_hh,
                                            preferred_element_type=jnp.float32)
                i = jax.nn.sigmoid(gates[:, 0 * H:1 * H])
                f = jax.nn.sigmoid(gates[:, 1 * H:2 * H])
                g = jnp.tanh(gates[:, 2 * H:3 * H])
                o = jax.nn.sigmoid(gates[:, 3 * H:4 * H])
                c_new = f * c + i * g
                h_new = o * jnp.tanh(c_new)
                y_scr[t] = h_new
                return (h_new, c_new)

            hN, cN = lax.fori_loop(0, T, body, (h0, c0), unroll=True)
            hN_ref[l] = hN
            cN_ref[l] = cN

        # ---- output head: VPU reduction, single lane-contiguous (T, B) store ----
        y = y_scr[...]                                  # (T, B, H)
        w_row = w_out_ref[...][0]                       # (H,)
        out_ref[...] = jnp.sum(y * w_row, axis=-1) + b_out_ref[0, 0]

    return kernel


def _full_spec(shape):
    nd = len(shape)
    return pl.BlockSpec(tuple(shape), lambda i, _nd=nd: (0,) * _nd)


# ---------------------------- parameter setup -----------------------------
def init_params(key, input_size, hidden_size, num_layers):
    """PyTorch-style init: U(-1/sqrt(H), 1/sqrt(H)) for every tensor."""
    k = 1.0 / np.sqrt(hidden_size)
    layers = []
    for l in range(num_layers):
        in_dim = input_size if l == 0 else hidden_size
        key, k1, k2, k3, k4 = jax.random.split(key, 5)
        layers.append(dict(
            w_ih=jax.random.uniform(k1, (4 * hidden_size, in_dim), jnp.float32, -k, k),
            w_hh=jax.random.uniform(k2, (4 * hidden_size, hidden_size), jnp.float32, -k, k),
            b_ih=jax.random.uniform(k3, (4 * hidden_size,), jnp.float32, -k, k),
            b_hh=jax.random.uniform(k4, (4 * hidden_size,), jnp.float32, -k, k),
        ))
    key, k5, k6 = jax.random.split(key, 3)
    return dict(
        layers=layers,
        w_out=jax.random.uniform(k5, (1, hidden_size), jnp.float32, -k, k),
        b_out=jax.random.uniform(k6, (1,), jnp.float32, -k, k),
    )


# ----------------------------- forward wrapper -----------------------------
def energy_consumption_net_forward(params, x, state=None):
    """x: (B, T, input_size). Returns (out (B, T, 1), (h_n, c_n) each (L, B, H))."""
    B, T, _ = x.shape
    L = len(params["layers"])
    H = params["layers"][0]["w_hh"].shape[-1]
    B_pad = max(8, -(-B // 8) * 8)                      # fill all 8 sublanes

    if state is None:
        h0 = jnp.zeros((L, B_pad, H), jnp.float32)
        c0 = jnp.zeros((L, B_pad, H), jnp.float32)
    else:
        h0_u, c0_u = state
        pad = ((0, 0), (0, B_pad - B), (0, 0))
        h0 = jnp.pad(h0_u.astype(jnp.float32), pad)
        c0 = jnp.pad(c0_u.astype(jnp.float32), pad)

    x_tm = jnp.transpose(x, (1, 0, 2)).astype(jnp.float32)         # (T, B, D)
    x_tm = jnp.pad(x_tm, ((0, 0), (0, B_pad - B), (0, 0)))         # (T, B_pad, D)

    inputs = [x_tm, h0, c0]
    for lp in params["layers"]:
        inputs.append(jnp.transpose(lp["w_ih"]).astype(jnp.float32))      # (D_in, 4H)
        inputs.append(jnp.transpose(lp["w_hh"]).astype(jnp.float32))      # (H, 4H)
        inputs.append((lp["b_ih"] + lp["b_hh"]).reshape(1, 4 * H).astype(jnp.float32))
    inputs.append(params["w_out"].astype(jnp.float32))                    # (1, H)
    inputs.append(params["b_out"].reshape(1, 1).astype(jnp.float32))      # (1, 1)

    out_shapes = (jax.ShapeDtypeStruct((T, B_pad), jnp.float32),          # out (time-major)
                  jax.ShapeDtypeStruct((L, B_pad, H), jnp.float32),       # h_n
                  jax.ShapeDtypeStruct((L, B_pad, H), jnp.float32))       # c_n

    kernel = _make_fused_kernel(L, T, B_pad, H)

    out_tb, h_n, c_n = pl.pallas_call(
        kernel,
        out_shape=out_shapes,
        grid_spec=pltpu.PrefetchScalarGridSpec(
            num_scalar_prefetch=0,
            grid=(1,),
            in_specs=[_full_spec(a.shape) for a in inputs],
            out_specs=[_full_spec(s.shape) for s in out_shapes],
            scratch_shapes=[
                pltpu.VMEM((T, B_pad, 4 * H), jnp.float32),   # precomputed input projection
                pltpu.VMEM((T, B_pad, H), jnp.float32),       # per-layer hidden outputs
            ],
        ),
        compiler_params=pltpu.CompilerParams(dimension_semantics=("arbitrary",)),
    )(*inputs)

    out = jnp.transpose(out_tb[:, :B], (1, 0))[..., None]   # (B, T, 1)
    return out, (h_n[:, :B], c_n[:, :B])


# --------------------------- pure-JAX reference ----------------------------
def _ref_forward(params, x):
    B, T, _ = x.shape
    H = params["layers"][0]["w_hh"].shape[-1]
    y = x.astype(jnp.float32)
    h_fin, c_fin = [], []
    for lp in params["layers"]:
        w_ih, w_hh, b = lp["w_ih"], lp["w_hh"], lp["b_ih"] + lp["b_hh"]

        def step(carry, x_t):
            h, c = carry
            gates = x_t @ w_ih.T + h @ w_hh.T + b
            i, f, g, o = jnp.split(gates, 4, axis=-1)
            c = jax.nn.sigmoid(f) * c + jax.nn.sigmoid(i) * jnp.tanh(g)
            h = jax.nn.sigmoid(o) * jnp.tanh(c)
            return (h, c), h

        init = (jnp.zeros((B, H), jnp.float32), jnp.zeros((B, H), jnp.float32))
        (hN, cN), ys = jax.lax.scan(step, init, jnp.transpose(y, (1, 0, 2)))
        y = jnp.transpose(ys, (1, 0, 2))
        h_fin.append(hN)
        c_fin.append(cN)
    out = y @ params["w_out"].T + params["b_out"]
    return out, (jnp.stack(h_fin), jnp.stack(c_fin))


if __name__ == "__main__":
    B, T, INPUT, HIDDEN, LAYERS = 2, 8, 8, 32, 2
    key = jax.random.PRNGKey(0)
    pkey, xkey = jax.random.split(key)
    params = init_params(pkey, INPUT, HIDDEN, LAYERS)
    x = jax.random.normal(xkey, (B, T, INPUT), jnp.float32)

    out, (h_n, c_n) = energy_consumption_net_forward(params, x)
    jax.block_until_ready((out, h_n, c_n))

    ref_out, (ref_h, ref_c) = _ref_forward(params, x)
    np.testing.assert_allclose(np.asarray(out), np.asarray(ref_out), rtol=1e-5, atol=1e-5)
    np.testing.assert_allclose(np.asarray(h_n), np.asarray(ref_h), rtol=1e-5, atol=1e-5)
    np.testing.assert_allclose(np.asarray(c_n), np.asarray(ref_c), rtol=1e-5, atol=1e-5)
    print("KERNEL_OK")
</pallas_src>

<mosaic_0001>
module attributes {stable_mosaic.version = 11 : i64} {
  func.func @kernel(%arg0: i32, %arg1: memref<8x8x8xf32, #tpu.memory_space<vmem>>, %arg2: memref<2x8x32xf32, #tpu.memory_space<vmem>>, %arg3: memref<2x8x32xf32, #tpu.memory_space<vmem>>, %arg4: memref<8x128xf32, #tpu.memory_space<vmem>>, %arg5: memref<32x128xf32, #tpu.memory_space<vmem>>, %arg6: memref<1x128xf32, #tpu.memory_space<vmem>>, %arg7: memref<32x128xf32, #tpu.memory_space<vmem>>, %arg8: memref<32x128xf32, #tpu.memory_space<vmem>>, %arg9: memref<1x128xf32, #tpu.memory_space<vmem>>, %arg10: memref<1x32xf32, #tpu.memory_space<vmem>>, %arg11: memref<1x1xf32, #tpu.memory_space<vmem>>, %arg12: memref<8x8xf32, #tpu.memory_space<vmem>>, %arg13: memref<2x8x32xf32, #tpu.memory_space<vmem>>, %arg14: memref<2x8x32xf32, #tpu.memory_space<vmem>>, %arg15: memref<8x8x128xf32, #tpu.memory_space<vmem>>, %arg16: memref<8x8x32xf32, #tpu.memory_space<vmem>>) attributes {dimension_semantics = [#tpu.dimension_semantics<arbitrary>], iteration_bounds = array<i64: 1>, scalar_prefetch = 0 : i64, scratch_operands = 2 : i64, tpu.core_type = #tpu.core_type<tc>, window_params = [{pipeline_mode = #tpu.pipeline_mode<synchronous>, transform_indices = @transform_0, window_bounds = array<i64: 8, 8, 8>}, {pipeline_mode = #tpu.pipeline_mode<synchronous>, transform_indices = @transform_1, window_bounds = array<i64: 2, 8, 32>}, {pipeline_mode = #tpu.pipeline_mode<synchronous>, transform_indices = @transform_2, window_bounds = array<i64: 2, 8, 32>}, {pipeline_mode = #tpu.pipeline_mode<synchronous>, transform_indices = @transform_3, window_bounds = array<i64: 8, 128>}, {pipeline_mode = #tpu.pipeline_mode<synchronous>, transform_indices = @transform_4, window_bounds = array<i64: 32, 128>}, {pipeline_mode = #tpu.pipeline_mode<synchronous>, transform_indices = @transform_5, window_bounds = array<i64: 1, 128>}, {pipeline_mode = #tpu.pipeline_mode<synchronous>, transform_indices = @transform_6, window_bounds = array<i64: 32, 128>}, {pipeline_mode = #tpu.pipeline_mode<synchronous>, transform_indices = @transform_7, window_bounds = array<i64: 32, 128>}, {pipeline_mode = #tpu.pipeline_mode<synchronous>, transform_indices = @transform_8, window_bounds = array<i64: 1, 128>}, {pipeline_mode = #tpu.pipeline_mode<synchronous>, transform_indices = @transform_9, window_bounds = array<i64: 1, 32>}, {pipeline_mode = #tpu.pipeline_mode<synchronous>, transform_indices = @transform_10, window_bounds = array<i64: 1, 1>}, {pipeline_mode = #tpu.pipeline_mode<synchronous>, transform_indices = @transform_11, window_bounds = array<i64: 8, 8>}, {pipeline_mode = #tpu.pipeline_mode<synchronous>, transform_indices = @transform_12, window_bounds = array<i64: 2, 8, 32>}, {pipeline_mode = #tpu.pipeline_mode<synchronous>, transform_indices = @transform_13, window_bounds = array<i64: 2, 8, 32>}]} {
    %c0 = arith.constant 0 : index
    %c0_0 = arith.constant 0 : index
    %c0_1 = arith.constant 0 : index
    %0 = vector.load %arg1[%c0, %c0_0, %c0_1] : memref<8x8x8xf32, #tpu.memory_space<vmem>>, vector<8x8x8xf32>
    %1 = vector.shape_cast %0 : vector<8x8x8xf32> to vector<64x8xf32>
    %c0_2 = arith.constant 0 : index
    %c0_3 = arith.constant 0 : index
    %2 = vector.load %arg4[%c0_2, %c0_3] : memref<8x128xf32, #tpu.memory_space<vmem>>, vector<8x128xf32>
    %cst = arith.constant dense<0.000000e+00> : vector<64x128xf32>
    %3 = tpu.matmul %1, %2, %cst {dimension_numbers = #tpu.dot_dimension_numbers<[1], [0], [0], [1], [0, 0, 1, 1], [], []>} : vector<64x8xf32>, vector<8x128xf32>, vector<64x128xf32> -> vector<64x128xf32>
    %c0_4 = arith.constant 0 : index
    %c0_5 = arith.constant 0 : index
    %4 = vector.load %arg6[%c0_4, %c0_5] : memref<1x128xf32, #tpu.memory_space<vmem>>, vector<1x128xf32>
    %5 = vector.broadcast %4 : vector<1x128xf32> to vector<64x128xf32>
    %6 = arith.addf %3, %5 : vector<64x128xf32>
    %7 = vector.shape_cast %6 : vector<64x128xf32> to vector<8x8x128xf32>
    %c0_6 = arith.constant 0 : index
    %c0_7 = arith.constant 0 : index
    %c0_8 = arith.constant 0 : index
    %8 = vector.load %arg15[%c0_6, %c0_7, %c0_8] : memref<8x8x128xf32, #tpu.memory_space<vmem>>, vector<8x8x128xf32>
    tpu.vector_store %arg15[%c0_6, %c0_7, %c0_8], %7 {strides = array<i32>} : memref<8x8x128xf32, #tpu.memory_space<vmem>>, vector<8x8x128xf32>,
    %c0_9 = arith.constant 0 : index
    %c0_10 = arith.constant 0 : index
    %9 = vector.load %arg5[%c0_9, %c0_10] : memref<32x128xf32, #tpu.memory_space<vmem>>, vector<32x128xf32>
    %c0_11 = arith.constant 0 : index
    %c0_12 = arith.constant 0 : index
    %c0_13 = arith.constant 0 : index
    %10 = vector.load %arg2[%c0_11, %c0_12, %c0_13] : memref<2x8x32xf32, #tpu.memory_space<vmem>>, vector<1x8x32xf32>
    %11 = vector.shape_cast %10 : vector<1x8x32xf32> to vector<8x32xf32>
    %c0_14 = arith.constant 0 : index
    %c0_15 = arith.constant 0 : index
    %c0_16 = arith.constant 0 : index
    %12 = vector.load %arg3[%c0_14, %c0_15, %c0_16] : memref<2x8x32xf32, #tpu.memory_space<vmem>>, vector<1x8x32xf32>
    %13 = vector.shape_cast %12 : vector<1x8x32xf32> to vector<8x32xf32>
    %c0_i32 = arith.constant 0 : i32
    %14 = arith.index_cast %c0_i32 : i32 to index
    %c0_17 = arith.constant 0 : index
    %c0_18 = arith.constant 0 : index
    %15 = vector.load %arg15[%14, %c0_17, %c0_18] : memref<8x8x128xf32, #tpu.memory_space<vmem>>, vector<1x8x128xf32>
    %16 = vector.shape_cast %15 : vector<1x8x128xf32> to vector<8x128xf32>
    %cst_19 = arith.constant dense<0.000000e+00> : vector<8x128xf32>
    %17 = tpu.matmul %11, %9, %cst_19 {dimension_numbers = #tpu.dot_dimension_numbers<[1], [0], [0], [1], [0, 0, 1, 1], [], []>} : vector<8x32xf32>, vector<32x128xf32>, vector<8x128xf32> -> vector<8x128xf32>
    %18 = arith.addf %16, %17 : vector<8x128xf32>
    %19 = vector.extract_strided_slice %18 {offsets = [0, 0], sizes = [8, 32], strides = [1, 1]} : vector<8x128xf32> to vector<8x32xf32>
    %20 = arith.negf %19 : vector<8x32xf32>
    %21 = math.exp %20 : vector<8x32xf32>
    %cst_20 = arith.constant 1.000000e+00 : f32
    %22 = vector.broadcast %cst_20 : f32 to vector<8x32xf32>
    %23 = arith.addf %22, %21 : vector<8x32xf32>
    %24 = arith.divf %22, %23 : vector<8x32xf32>
    %25 = vector.extract_strided_slice %18 {offsets = [0, 32], sizes = [8, 32], strides = [1, 1]} : vector<8x128xf32> to vector<8x32xf32>
    %26 = arith.negf %25 : vector<8x32xf32>
    %27 = math.exp %26 : vector<8x32xf32>
    %cst_21 = arith.constant 1.000000e+00 : f32
    %28 = vector.broadcast %cst_21 : f32 to vector<8x32xf32>
    %29 = arith.addf %28, %27 : vector<8x32xf32>
    %30 = arith.divf %28, %29 : vector<8x32xf32>
    %31 = vector.extract_strided_slice %18 {offsets = [0, 64], sizes = [8, 32], strides = [1, 1]} : vector<8x128xf32> to vector<8x32xf32>
    %32 = math.tanh %31 : vector<8x32xf32>
    %33 = vector.extract_strided_slice %18 {offsets = [0, 96], sizes = [8, 32], strides = [1, 1]} : vector<8x128xf32> to vector<8x32xf32>
    %34 = arith.negf %33 : vector<8x32xf32>
    %35 = math.exp %34 : vector<8x32xf32>
    %cst_22 = arith.constant 1.000000e+00 : f32
    %36 = vector.broadcast %cst_22 : f32 to vector<8x32xf32>
    %37 = arith.addf %36, %35 : vector<8x32xf32>
    %38 = arith.divf %36, %37 : vector<8x32xf32>
    %39 = arith.mulf %30, %13 : vector<8x32xf32>
    %40 = arith.mulf %24, %32 : vector<8x32xf32>
    %41 = arith.addf %39, %40 : vector<8x32xf32>
    %42 = math.tanh %41 : vector<8x32xf32>
    %43 = arith.mulf %38, %42 : vector<8x32xf32>
    %44 = arith.index_cast %c0_i32 : i32 to index
    %c0_23 = arith.constant 0 : index
    %c0_24 = arith.constant 0 : index
    %45 = vector.load %arg16[%44, %c0_23, %c0_24] : memref<8x8x32xf32, #tpu.memory_space<vmem>>, vector<1x8x32xf32>
    %46 = vector.shape_cast %45 : vector<1x8x32xf32> to vector<8x32xf32>
    %47 = vector.shape_cast %43 : vector<8x32xf32> to vector<1x8x32xf32>
    tpu.vector_store %arg16[%44, %c0_23, %c0_24], %47 {strides = array<i32>} : memref<8x8x32xf32, #tpu.memory_space<vmem>>, vector<1x8x32xf32>,
    %c1_i32 = arith.constant 1 : i32
    %48 = arith.index_cast %c1_i32 : i32 to index
    %c0_25 = arith.constant 0 : index
    %c0_26 = arith.constant 0 : index
    %49 = vector.load %arg15[%48, %c0_25, %c0_26] : memref<8x8x128xf32, #tpu.memory_space<vmem>>, vector<1x8x128xf32>
    %50 = vector.shape_cast %49 : vector<1x8x128xf32> to vector<8x128xf32>
    %cst_27 = arith.constant dense<0.000000e+00> : vector<8x128xf32>
    %51 = tpu.matmul %43, %9, %cst_27 {dimension_numbers = #tpu.dot_dimension_numbers<[1], [0], [0], [1], [0, 0, 1, 1], [], []>} : vector<8x32xf32>, vector<32x128xf32>, vector<8x128xf32> -> vector<8x128xf32>
    %52 = arith.addf %50, %51 : vector<8x128xf32>
    %53 = vector.extract_strided_slice %52 {offsets = [0, 0], sizes = [8, 32], strides = [1, 1]} : vector<8x128xf32> to vector<8x32xf32>
    %54 = arith.negf %53 : vector<8x32xf32>
    %55 = math.exp %54 : vector<8x32xf32>
    %cst_28 = arith.constant 1.000000e+00 : f32
    %56 = vector.broadcast %cst_28 : f32 to vector<8x32xf32>
    %57 = arith.addf %56, %55 : vector<8x32xf32>
    %58 = arith.divf %56, %57 : vector<8x32xf32>
    %59 = vector.extract_strided_slice %52 {offsets = [0, 32], sizes = [8, 32], strides = [1, 1]} : vector<8x128xf32> to vector<8x32xf32>
    %60 = arith.negf %59 : vector<8x32xf32>
    %61 = math.exp %60 : vector<8x32xf32>
    %cst_29 = arith.constant 1.000000e+00 : f32
    %62 = vector.broadcast %cst_29 : f32 to vector<8x32xf32>
    %63 = arith.addf %62, %61 : vector<8x32xf32>
    %64 = arith.divf %62, %63 : vector<8x32xf32>
    %65 = vector.extract_strided_slice %52 {offsets = [0, 64], sizes = [8, 32], strides = [1, 1]} : vector<8x128xf32> to vector<8x32xf32>
    %66 = math.tanh %65 : vector<8x32xf32>
    %67 = vector.extract_strided_slice %52 {offsets = [0, 96], sizes = [8, 32], strides = [1, 1]} : vector<8x128xf32> to vector<8x32xf32>
    %68 = arith.negf %67 : vector<8x32xf32>
    %69 = math.exp %68 : vector<8x32xf32>
    %cst_30 = arith.constant 1.000000e+00 : f32
    %70 = vector.broadcast %cst_30 : f32 to vector<8x32xf32>
    %71 = arith.addf %70, %69 : vector<8x32xf32>
    %72 = arith.divf %70, %71 : vector<8x32xf32>
    %73 = arith.mulf %64, %41 : vector<8x32xf32>
    %74 = arith.mulf %58, %66 : vector<8x32xf32>
    %75 = arith.addf %73, %74 : vector<8x32xf32>
    %76 = math.tanh %75 : vector<8x32xf32>
    %77 = arith.mulf %72, %76 : vector<8x32xf32>
    %78 = arith.index_cast %c1_i32 : i32 to index
    %c0_31 = arith.constant 0 : index
    %c0_32 = arith.constant 0 : index
    %79 = vector.load %arg16[%78, %c0_31, %c0_32] : memref<8x8x32xf32, #tpu.memory_space<vmem>>, vector<1x8x32xf32>
    %80 = vector.shape_cast %79 : vector<1x8x32xf32> to vector<8x32xf32>
    %81 = vector.shape_cast %77 : vector<8x32xf32> to vector<1x8x32xf32>
    tpu.vector_store %arg16[%78, %c0_31, %c0_32], %81 {strides = array<i32>} : memref<8x8x32xf32, #tpu.memory_space<vmem>>, vector<1x8x32xf32>,
    %c2_i32 = arith.constant 2 : i32
    %82 = arith.index_cast %c2_i32 : i32 to index
    %c0_33 = arith.constant 0 : index
    %c0_34 = arith.constant 0 : index
    %83 = vector.load %arg15[%82, %c0_33, %c0_34] : memref<8x8x128xf32, #tpu.memory_space<vmem>>, vector<1x8x128xf32>
    %84 = vector.shape_cast %83 : vector<1x8x128xf32> to vector<8x128xf32>
    %cst_35 = arith.constant dense<0.000000e+00> : vector<8x128xf32>
    %85 = tpu.matmul %77, %9, %cst_35 {dimension_numbers = #tpu.dot_dimension_numbers<[1], [0], [0], [1], [0, 0, 1, 1], [], []>} : vector<8x32xf32>, vector<32x128xf32>, vector<8x128xf32> -> vector<8x128xf32>
    %86 = arith.addf %84, %85 : vector<8x128xf32>
    %87 = vector.extract_strided_slice %86 {offsets = [0, 0], sizes = [8, 32], strides = [1, 1]} : vector<8x128xf32> to vector<8x32xf32>
    %88 = arith.negf %87 : vector<8x32xf32>
    %89 = math.exp %88 : vector<8x32xf32>
    %cst_36 = arith.constant 1.000000e+00 : f32
    %90 = vector.broadcast %cst_36 : f32 to vector<8x32xf32>
    %91 = arith.addf %90, %89 : vector<8x32xf32>
    %92 = arith.divf %90, %91 : vector<8x32xf32>
    %93 = vector.extract_strided_slice %86 {offsets = [0, 32], sizes = [8, 32], strides = [1, 1]} : vector<8x128xf32> to vector<8x32xf32>
    %94 = arith.negf %93 : vector<8x32xf32>
    %95 = math.exp %94 : vector<8x32xf32>
    %cst_37 = arith.constant 1.000000e+00 : f32
    %96 = vector.broadcast %cst_37 : f32 to vector<8x32xf32>
    %97 = arith.addf %96, %95 : vector<8x32xf32>
    %98 = arith.divf %96, %97 : vector<8x32xf32>
    %99 = vector.extract_strided_slice %86 {offsets = [0, 64], sizes = [8, 32], strides = [1, 1]} : vector<8x128xf32> to vector<8x32xf32>
    %100 = math.tanh %99 : vector<8x32xf32>
    %101 = vector.extract_strided_slice %86 {offsets = [0, 96], sizes = [8, 32], strides = [1, 1]} : vector<8x128xf32> to vector<8x32xf32>
    %102 = arith.negf %101 : vector<8x32xf32>
    %103 = math.exp %102 : vector<8x32xf32>
    %cst_38 = arith.constant 1.000000e+00 : f32
    %104 = vector.broadcast %cst_38 : f32 to vector<8x32xf32>
    %105 = arith.addf %104, %103 : vector<8x32xf32>
    %106 = arith.divf %104, %105 : vector<8x32xf32>
    %107 = arith.mulf %98, %75 : vector<8x32xf32>
    %108 = arith.mulf %92, %100 : vector<8x32xf32>
    %109 = arith.addf %107, %108 : vector<8x32xf32>
    %110 = math.tanh %109 : vector<8x32xf32>
    %111 = arith.mulf %106, %110 : vector<8x32xf32>
    %112 = arith.index_cast %c2_i32 : i32 to index
    %c0_39 = arith.constant 0 : index
    %c0_40 = arith.constant 0 : index
    %113 = vector.load %arg16[%112, %c0_39, %c0_40] : memref<8x8x32xf32, #tpu.memory_space<vmem>>, vector<1x8x32xf32>
    %114 = vector.shape_cast %113 : vector<1x8x32xf32> to vector<8x32xf32>
    %115 = vector.shape_cast %111 : vector<8x32xf32> to vector<1x8x32xf32>
    tpu.vector_store %arg16[%112, %c0_39, %c0_40], %115 {strides = array<i32>} : memref<8x8x32xf32, #tpu.memory_space<vmem>>, vector<1x8x32xf32>,
    %c3_i32 = arith.constant 3 : i32
    %116 = arith.index_cast %c3_i32 : i32 to index
    %c0_41 = arith.constant 0 : index
    %c0_42 = arith.constant 0 : index
    %117 = vector.load %arg15[%116, %c0_41, %c0_42] : memref<8x8x128xf32, #tpu.memory_space<vmem>>, vector<1x8x128xf32>
    %118 = vector.shape_cast %117 : vector<1x8x128xf32> to vector<8x128xf32>
    %cst_43 = arith.constant dense<0.000000e+00> : vector<8x128xf32>
    %119 = tpu.matmul %111, %9, %cst_43 {dimension_numbers = #tpu.dot_dimension_numbers<[1], [0], [0], [1], [0, 0, 1, 1], [], []>} : vector<8x32xf32>, vector<32x128xf32>, vector<8x128xf32> -> vector<8x128xf32>
    %120 = arith.addf %118, %119 : vector<8x128xf32>
    %121 = vector.extract_strided_slice %120 {offsets = [0, 0], sizes = [8, 32], strides = [1, 1]} : vector<8x128xf32> to vector<8x32xf32>
    %122 = arith.negf %121 : vector<8x32xf32>
    %123 = math.exp %122 : vector<8x32xf32>
    %cst_44 = arith.constant 1.000000e+00 : f32
    %124 = vector.broadcast %cst_44 : f32 to vector<8x32xf32>
    %125 = arith.addf %124, %123 : vector<8x32xf32>
    %126 = arith.divf %124, %125 : vector<8x32xf32>
    %127 = vector.extract_strided_slice %120 {offsets = [0, 32], sizes = [8, 32], strides = [1, 1]} : vector<8x128xf32> to vector<8x32xf32>
    %128 = arith.negf %127 : vector<8x32xf32>
    %129 = math.exp %128 : vector<8x32xf32>
    %cst_45 = arith.constant 1.000000e+00 : f32
    %130 = vector.broadcast %cst_45 : f32 to vector<8x32xf32>
    %131 = arith.addf %130, %129 : vector<8x32xf32>
    %132 = arith.divf %130, %131 : vector<8x32xf32>
    %133 = vector.extract_strided_slice %120 {offsets = [0, 64], sizes = [8, 32], strides = [1, 1]} : vector<8x128xf32> to vector<8x32xf32>
    %134 = math.tanh %133 : vector<8x32xf32>
    %135 = vector.extract_strided_slice %120 {offsets = [0, 96], sizes = [8, 32], strides = [1, 1]} : vector<8x128xf32> to vector<8x32xf32>
    %136 = arith.negf %135 : vector<8x32xf32>
    %137 = math.exp %136 : vector<8x32xf32>
    %cst_46 = arith.constant 1.000000e+00 : f32
    %138 = vector.broadcast %cst_46 : f32 to vector<8x32xf32>
    %139 = arith.addf %138, %137 : vector<8x32xf32>
    %140 = arith.divf %138, %139 : vector<8x32xf32>
    %141 = arith.mulf %132, %109 : vector<8x32xf32>
    %142 = arith.mulf %126, %134 : vector<8x32xf32>
    %143 = arith.addf %141, %142 : vector<8x32xf32>
    %144 = math.tanh %143 : vector<8x32xf32>
    %145 = arith.mulf %140, %144 : vector<8x32xf32>
    %146 = arith.index_cast %c3_i32 : i32 to index
    %c0_47 = arith.constant 0 : index
    %c0_48 = arith.constant 0 : index
    %147 = vector.load %arg16[%146, %c0_47, %c0_48] : memref<8x8x32xf32, #tpu.memory_space<vmem>>, vector<1x8x32xf32>
    %148 = vector.shape_cast %147 : vector<1x8x32xf32> to vector<8x32xf32>
    %149 = vector.shape_cast %145 : vector<8x32xf32> to vector<1x8x32xf32>
    tpu.vector_store %arg16[%146, %c0_47, %c0_48], %149 {strides = array<i32>} : memref<8x8x32xf32, #tpu.memory_space<vmem>>, vector<1x8x32xf32>,
    %c4_i32 = arith.constant 4 : i32
    %150 = arith.index_cast %c4_i32 : i32 to index
    %c0_49 = arith.constant 0 : index
    %c0_50 = arith.constant 0 : index
    %151 = vector.load %arg15[%150, %c0_49, %c0_50] : memref<8x8x128xf32, #tpu.memory_space<vmem>>, vector<1x8x128xf32>
    %152 = vector.shape_cast %151 : vector<1x8x128xf32> to vector<8x128xf32>
    %cst_51 = arith.constant dense<0.000000e+00> : vector<8x128xf32>
    %153 = tpu.matmul %145, %9, %cst_51 {dimension_numbers = #tpu.dot_dimension_numbers<[1], [0], [0], [1], [0, 0, 1, 1], [], []>} : vector<8x32xf32>, vector<32x128xf32>, vector<8x128xf32> -> vector<8x128xf32>
    %154 = arith.addf %152, %153 : vector<8x128xf32>
    %155 = vector.extract_strided_slice %154 {offsets = [0, 0], sizes = [8, 32], strides = [1, 1]} : vector<8x128xf32> to vector<8x32xf32>
    %156 = arith.negf %155 : vector<8x32xf32>
    %157 = math.exp %156 : vector<8x32xf32>
    %cst_52 = arith.constant 1.000000e+00 : f32
    %158 = vector.broadcast %cst_52 : f32 to vector<8x32xf32>
    %159 = arith.addf %158, %157 : vector<8x32xf32>
    %160 = arith.divf %158, %159 : vector<8x32xf32>
    %161 = vector.extract_strided_slice %154 {offsets = [0, 32], sizes = [8, 32], strides = [1, 1]} : vector<8x128xf32> to vector<8x32xf32>
    %162 = arith.negf %161 : vector<8x32xf32>
    %163 = math.exp %162 : vector<8x32xf32>
    %cst_53 = arith.constant 1.000000e+00 : f32
    %164 = vector.broadcast %cst_53 : f32 to vector<8x32xf32>
    %165 = arith.addf %164, %163 : vector<8x32xf32>
    %166 = arith.divf %164, %165 : vector<8x32xf32>
    %167 = vector.extract_strided_slice %154 {offsets = [0, 64], sizes = [8, 32], strides = [1, 1]} : vector<8x128xf32> to vector<8x32xf32>
    %168 = math.tanh %167 : vector<8x32xf32>
    %169 = vector.extract_strided_slice %154 {offsets = [0, 96], sizes = [8, 32], strides = [1, 1]} : vector<8x128xf32> to vector<8x32xf32>
    %170 = arith.negf %169 : vector<8x32xf32>
    %171 = math.exp %170 : vector<8x32xf32>
    %cst_54 = arith.constant 1.000000e+00 : f32
    %172 = vector.broadcast %cst_54 : f32 to vector<8x32xf32>
    %173 = arith.addf %172, %171 : vector<8x32xf32>
    %174 = arith.divf %172, %173 : vector<8x32xf32>
    %175 = arith.mulf %166, %143 : vector<8x32xf32>
    %176 = arith.mulf %160, %168 : vector<8x32xf32>
    %177 = arith.addf %175, %176 : vector<8x32xf32>
    %178 = math.tanh %177 : vector<8x32xf32>
    %179 = arith.mulf %174, %178 : vector<8x32xf32>
    %180 = arith.index_cast %c4_i32 : i32 to index
    %c0_55 = arith.constant 0 : index
    %c0_56 = arith.constant 0 : index
    %181 = vector.load %arg16[%180, %c0_55, %c0_56] : memref<8x8x32xf32, #tpu.memory_space<vmem>>, vector<1x8x32xf32>
    %182 = vector.shape_cast %181 : vector<1x8x32xf32> to vector<8x32xf32>
    %183 = vector.shape_cast %179 : vector<8x32xf32> to vector<1x8x32xf32>
    tpu.vector_store %arg16[%180, %c0_55, %c0_56], %183 {strides = array<i32>} : memref<8x8x32xf32, #tpu.memory_space<vmem>>, vector<1x8x32xf32>,
    %c5_i32 = arith.constant 5 : i32
    %184 = arith.index_cast %c5_i32 : i32 to index
    %c0_57 = arith.constant 0 : index
    %c0_58 = arith.constant 0 : index
    %185 = vector.load %arg15[%184, %c0_57, %c0_58] : memref<8x8x128xf32, #tpu.memory_space<vmem>>, vector<1x8x128xf32>
    %186 = vector.shape_cast %185 : vector<1x8x128xf32> to vector<8x128xf32>
    %cst_59 = arith.constant dense<0.000000e+00> : vector<8x128xf32>
    %187 = tpu.matmul %179, %9, %cst_59 {dimension_numbers = #tpu.dot_dimension_numbers<[1], [0], [0], [1], [0, 0, 1, 1], [], []>} : vector<8x32xf32>, vector<32x128xf32>, vector<8x128xf32> -> vector<8x128xf32>
    %188 = arith.addf %186, %187 : vector<8x128xf32>
    %189 = vector.extract_strided_slice %188 {offsets = [0, 0], sizes = [8, 32], strides = [1, 1]} : vector<8x128xf32> to vector<8x32xf32>
    %190 = arith.negf %189 : vector<8x32xf32>
    %191 = math.exp %190 : vector<8x32xf32>
    %cst_60 = arith.constant 1.000000e+00 : f32
    %192 = vector.broadcast %cst_60 : f32 to vector<8x32xf32>
    %193 = arith.addf %192, %191 : vector<8x32xf32>
    %194 = arith.divf %192, %193 : vector<8x32xf32>
    %195 = vector.extract_strided_slice %188 {offsets = [0, 32], sizes = [8, 32], strides = [1, 1]} : vector<8x128xf32> to vector<8x32xf32>
    %196 = arith.negf %195 : vector<8x32xf32>
    %197 = math.exp %196 : vector<8x32xf32>
    %cst_61 = arith.constant 1.000000e+00 : f32
    %198 = vector.broadcast %cst_61 : f32 to vector<8x32xf32>
    %199 = arith.addf %198, %197 : vector<8x32xf32>
    %200 = arith.divf %198, %199 : vector<8x32xf32>
    %201 = vector.extract_strided_slice %188 {offsets = [0, 64], sizes = [8, 32], strides = [1, 1]} : vector<8x128xf32> to vector<8x32xf32>
    %202 = math.tanh %201 : vector<8x32xf32>
    %203 = vector.extract_strided_slice %188 {offsets = [0, 96], sizes = [8, 32], strides = [1, 1]} : vector<8x128xf32> to vector<8x32xf32>
    %204 = arith.negf %203 : vector<8x32xf32>
    %205 = math.exp %204 : vector<8x32xf32>
    %cst_62 = arith.constant 1.000000e+00 : f32
    %206 = vector.broadcast %cst_62 : f32 to vector<8x32xf32>
    %207 = arith.addf %206, %205 : vector<8x32xf32>
    %208 = arith.divf %206, %207 : vector<8x32xf32>
    %209 = arith.mulf %200, %177 : vector<8x32xf32>
    %210 = arith.mulf %194, %202 : vector<8x32xf32>
    %211 = arith.addf %209, %210 : vector<8x32xf32>
    %212 = math.tanh %211 : vector<8x32xf32>
    %213 = arith.mulf %208, %212 : vector<8x32xf32>
    %214 = arith.index_cast %c5_i32 : i32 to index
    %c0_63 = arith.constant 0 : index
    %c0_64 = arith.constant 0 : index
    %215 = vector.load %arg16[%214, %c0_63, %c0_64] : memref<8x8x32xf32, #tpu.memory_space<vmem>>, vector<1x8x32xf32>
    %216 = vector.shape_cast %215 : vector<1x8x32xf32> to vector<8x32xf32>
    %217 = vector.shape_cast %213 : vector<8x32xf32> to vector<1x8x32xf32>
    tpu.vector_store %arg16[%214, %c0_63, %c0_64], %217 {strides = array<i32>} : memref<8x8x32xf32, #tpu.memory_space<vmem>>, vector<1x8x32xf32>,
    %c6_i32 = arith.constant 6 : i32
    %218 = arith.index_cast %c6_i32 : i32 to index
    %c0_65 = arith.constant 0 : index
    %c0_66 = arith.constant 0 : index
    %219 = vector.load %arg15[%218, %c0_65, %c0_66] : memref<8x8x128xf32, #tpu.memory_space<vmem>>, vector<1x8x128xf32>
    %220 = vector.shape_cast %219 : vector<1x8x128xf32> to vector<8x128xf32>
    %cst_67 = arith.constant dense<0.000000e+00> : vector<8x128xf32>
    %221 = tpu.matmul %213, %9, %cst_67 {dimension_numbers = #tpu.dot_dimension_numbers<[1], [0], [0], [1], [0, 0, 1, 1], [], []>} : vector<8x32xf32>, vector<32x128xf32>, vector<8x128xf32> -> vector<8x128xf32>
    %222 = arith.addf %220, %221 : vector<8x128xf32>
    %223 = vector.extract_strided_slice %222 {offsets = [0, 0], sizes = [8, 32], strides = [1, 1]} : vector<8x128xf32> to vector<8x32xf32>
    %224 = arith.negf %223 : vector<8x32xf32>
    %225 = math.exp %224 : vector<8x32xf32>
    %cst_68 = arith.constant 1.000000e+00 : f32
    %226 = vector.broadcast %cst_68 : f32 to vector<8x32xf32>
    %227 = arith.addf %226, %225 : vector<8x32xf32>
    %228 = arith.divf %226, %227 : vector<8x32xf32>
    %229 = vector.extract_strided_slice %222 {offsets = [0, 32], sizes = [8, 32], strides = [1, 1]} : vector<8x128xf32> to vector<8x32xf32>
    %230 = arith.negf %229 : vector<8x32xf32>
    %231 = math.exp %230 : vector<8x32xf32>
    %cst_69 = arith.constant 1.000000e+00 : f32
    %232 = vector.broadcast %cst_69 : f32 to vector<8x32xf32>
    %233 = arith.addf %232, %231 : vector<8x32xf32>
    %234 = arith.divf %232, %233 : vector<8x32xf32>
    %235 = vector.extract_strided_slice %222 {offsets = [0, 64], sizes = [8, 32], strides = [1, 1]} : vector<8x128xf32> to vector<8x32xf32>
    %236 = math.tanh %235 : vector<8x32xf32>
    %237 = vector.extract_strided_slice %222 {offsets = [0, 96], sizes = [8, 32], strides = [1, 1]} : vector<8x128xf32> to vector<8x32xf32>
    %238 = arith.negf %237 : vector<8x32xf32>
    %239 = math.exp %238 : vector<8x32xf32>
    %cst_70 = arith.constant 1.000000e+00 : f32
    %240 = vector.broadcast %cst_70 : f32 to vector<8x32xf32>
    %241 = arith.addf %240, %239 : vector<8x32xf32>
    %242 = arith.divf %240, %241 : vector<8x32xf32>
    %243 = arith.mulf %234, %211 : vector<8x32xf32>
    %244 = arith.mulf %228, %236 : vector<8x32xf32>
    %245 = arith.addf %243, %244 : vector<8x32xf32>
    %246 = math.tanh %245 : vector<8x32xf32>
    %247 = arith.mulf %242, %246 : vector<8x32xf32>
    %248 = arith.index_cast %c6_i32 : i32 to index
    %c0_71 = arith.constant 0 : index
    %c0_72 = arith.constant 0 : index
    %249 = vector.load %arg16[%248, %c0_71, %c0_72] : memref<8x8x32xf32, #tpu.memory_space<vmem>>, vector<1x8x32xf32>
    %250 = vector.shape_cast %249 : vector<1x8x32xf32> to vector<8x32xf32>
    %251 = vector.shape_cast %247 : vector<8x32xf32> to vector<1x8x32xf32>
    tpu.vector_store %arg16[%248, %c0_71, %c0_72], %251 {strides = array<i32>} : memref<8x8x32xf32, #tpu.memory_space<vmem>>, vector<1x8x32xf32>,
    %c7_i32 = arith.constant 7 : i32
    %252 = arith.index_cast %c7_i32 : i32 to index
    %c0_73 = arith.constant 0 : index
    %c0_74 = arith.constant 0 : index
    %253 = vector.load %arg15[%252, %c0_73, %c0_74] : memref<8x8x128xf32, #tpu.memory_space<vmem>>, vector<1x8x128xf32>
    %254 = vector.shape_cast %253 : vector<1x8x128xf32> to vector<8x128xf32>
    %cst_75 = arith.constant dense<0.000000e+00> : vector<8x128xf32>
    %255 = tpu.matmul %247, %9, %cst_75 {dimension_numbers = #tpu.dot_dimension_numbers<[1], [0], [0], [1], [0, 0, 1, 1], [], []>} : vector<8x32xf32>, vector<32x128xf32>, vector<8x128xf32> -> vector<8x128xf32>
    %256 = arith.addf %254, %255 : vector<8x128xf32>
    %257 = vector.extract_strided_slice %256 {offsets = [0, 0], sizes = [8, 32], strides = [1, 1]} : vector<8x128xf32> to vector<8x32xf32>
    %258 = arith.negf %257 : vector<8x32xf32>
    %259 = math.exp %258 : vector<8x32xf32>
    %cst_76 = arith.constant 1.000000e+00 : f32
    %260 = vector.broadcast %cst_76 : f32 to vector<8x32xf32>
    %261 = arith.addf %260, %259 : vector<8x32xf32>
    %262 = arith.divf %260, %261 : vector<8x32xf32>
    %263 = vector.extract_strided_slice %256 {offsets = [0, 32], sizes = [8, 32], strides = [1, 1]} : vector<8x128xf32> to vector<8x32xf32>
    %264 = arith.negf %263 : vector<8x32xf32>
    %265 = math.exp %264 : vector<8x32xf32>
    %cst_77 = arith.constant 1.000000e+00 : f32
    %266 = vector.broadcast %cst_77 : f32 to vector<8x32xf32>
    %267 = arith.addf %266, %265 : vector<8x32xf32>
    %268 = arith.divf %266, %267 : vector<8x32xf32>
    %269 = vector.extract_strided_slice %256 {offsets = [0, 64], sizes = [8, 32], strides = [1, 1]} : vector<8x128xf32> to vector<8x32xf32>
    %270 = math.tanh %269 : vector<8x32xf32>
    %271 = vector.extract_strided_slice %256 {offsets = [0, 96], sizes = [8, 32], strides = [1, 1]} : vector<8x128xf32> to vector<8x32xf32>
    %272 = arith.negf %271 : vector<8x32xf32>
    %273 = math.exp %272 : vector<8x32xf32>
    %cst_78 = arith.constant 1.000000e+00 : f32
    %274 = vector.broadcast %cst_78 : f32 to vector<8x32xf32>
    %275 = arith.addf %274, %273 : vector<8x32xf32>
    %276 = arith.divf %274, %275 : vector<8x32xf32>
    %277 = arith.mulf %268, %245 : vector<8x32xf32>
    %278 = arith.mulf %262, %270 : vector<8x32xf32>
    %279 = arith.addf %277, %278 : vector<8x32xf32>
    %280 = math.tanh %279 : vector<8x32xf32>
    %281 = arith.mulf %276, %280 : vector<8x32xf32>
    %282 = arith.index_cast %c7_i32 : i32 to index
    %c0_79 = arith.constant 0 : index
    %c0_80 = arith.constant 0 : index
    %283 = vector.load %arg16[%282, %c0_79, %c0_80] : memref<8x8x32xf32, #tpu.memory_space<vmem>>, vector<1x8x32xf32>
    %284 = vector.shape_cast %283 : vector<1x8x32xf32> to vector<8x32xf32>
    %285 = vector.shape_cast %281 : vector<8x32xf32> to vector<1x8x32xf32>
    tpu.vector_store %arg16[%282, %c0_79, %c0_80], %285 {strides = array<i32>} : memref<8x8x32xf32, #tpu.memory_space<vmem>>, vector<1x8x32xf32>,
    %c8_i32 = arith.constant 8 : i32
    %c0_81 = arith.constant 0 : index
    %c0_82 = arith.constant 0 : index
    %c0_83 = arith.constant 0 : index
    %286 = vector.load %arg13[%c0_81, %c0_82, %c0_83] : memref<2x8x32xf32, #tpu.memory_space<vmem>>, vector<1x8x32xf32>
    %287 = vector.shape_cast %286 : vector<1x8x32xf32> to vector<8x32xf32>
    %288 = vector.shape_cast %281 : vector<8x32xf32> to vector<1x8x32xf32>
    tpu.vector_store %arg13[%c0_81, %c0_82, %c0_83], %288 {strides = array<i32>} : memref<2x8x32xf32, #tpu.memory_space<vmem>>, vector<1x8x32xf32>,
    %c0_84 = arith.constant 0 : index
    %c0_85 = arith.constant 0 : index
    %c0_86 = arith.constant 0 : index
    %289 = vector.load %arg14[%c0_84, %c0_85, %c0_86] : memref<2x8x32xf32, #tpu.memory_space<vmem>>, vector<1x8x32xf32>
    %290 = vector.shape_cast %289 : vector<1x8x32xf32> to vector<8x32xf32>
    %291 = vector.shape_cast %279 : vector<8x32xf32> to vector<1x8x32xf32>
    tpu.vector_store %arg14[%c0_84, %c0_85, %c0_86], %291 {strides = array<i32>} : memref<2x8x32xf32, #tpu.memory_space<vmem>>, vector<1x8x32xf32>,
    %c0_87 = arith.constant 0 : index
    %c0_88 = arith.constant 0 : index
    %c0_89 = arith.constant 0 : index
    %292 = vector.load %arg16[%c0_87, %c0_88, %c0_89] : memref<8x8x32xf32, #tpu.memory_space<vmem>>, vector<8x8x32xf32>
    %293 = vector.shape_cast %292 : vector<8x8x32xf32> to vector<64x32xf32>
    %c0_90 = arith.constant 0 : index
    %c0_91 = arith.constant 0 : index
    %294 = vector.load %arg7[%c0_90, %c0_91] : memref<32x128xf32, #tpu.memory_space<vmem>>, vector<32x128xf32>
    %cst_92 = arith.constant dense<0.000000e+00> : vector<64x128xf32>
    %295 = tpu.matmul %293, %294, %cst_92 {dimension_numbers = #tpu.dot_dimension_numbers<[1], [0], [0], [1], [0, 0, 1, 1], [], []>} : vector<64x32xf32>, vector<32x128xf32>, vector<64x128xf32> -> vector<64x128xf32>
    %c0_93 = arith.constant 0 : index
    %c0_94 = arith.constant 0 : index
    %296 = vector.load %arg9[%c0_93, %c0_94] : memref<1x128xf32, #tpu.memory_space<vmem>>, vector<1x128xf32>
    %297 = vector.broadcast %296 : vector<1x128xf32> to vector<64x128xf32>
    %298 = arith.addf %295, %297 : vector<64x128xf32>
    %299 = vector.shape_cast %298 : vector<64x128xf32> to vector<8x8x128xf32>
    %c0_95 = arith.constant 0 : index
    %c0_96 = arith.constant 0 : index
    %c0_97 = arith.constant 0 : index
    %300 = vector.load %arg15[%c0_95, %c0_96, %c0_97] : memref<8x8x128xf32, #tpu.memory_space<vmem>>, vector<8x8x128xf32>
    tpu.vector_store %arg15[%c0_95, %c0_96, %c0_97], %299 {strides = array<i32>} : memref<8x8x128xf32, #tpu.memory_space<vmem>>, vector<8x8x128xf32>,
    %c0_98 = arith.constant 0 : index
    %c0_99 = arith.constant 0 : index
    %301 = vector.load %arg8[%c0_98, %c0_99] : memref<32x128xf32, #tpu.memory_space<vmem>>, vector<32x128xf32>
    %c1 = arith.constant 1 : index
    %c0_100 = arith.constant 0 : index
    %c0_101 = arith.constant 0 : index
    %302 = vector.load %arg2[%c1, %c0_100, %c0_101] : memref<2x8x32xf32, #tpu.memory_space<vmem>>, vector<1x8x32xf32>
    %303 = vector.shape_cast %302 : vector<1x8x32xf32> to vector<8x32xf32>
    %c1_102 = arith.constant 1 : index
    %c0_103 = arith.constant 0 : index
    %c0_104 = arith.constant 0 : index
    %304 = vector.load %arg3[%c1_102, %c0_103, %c0_104] : memref<2x8x32xf32, #tpu.memory_space<vmem>>, vector<1x8x32xf32>
    %305 = vector.shape_cast %304 : vector<1x8x32xf32> to vector<8x32xf32>
    %c0_i32_105 = arith.constant 0 : i32
    %306 = arith.index_cast %c0_i32_105 : i32 to index
    %c0_106 = arith.constant 0 : index
    %c0_107 = arith.constant 0 : index
    %307 = vector.load %arg15[%306, %c0_106, %c0_107] : memref<8x8x128xf32, #tpu.memory_space<vmem>>, vector<1x8x128xf32>
    %308 = vector.shape_cast %307 : vector<1x8x128xf32> to vector<8x128xf32>
    %cst_108 = arith.constant dense<0.000000e+00> : vector<8x128xf32>
    %309 = tpu.matmul %303, %301, %cst_108 {dimension_numbers = #tpu.dot_dimension_numbers<[1], [0], [0], [1], [0, 0, 1, 1], [], []>} : vector<8x32xf32>, vector<32x128xf32>, vector<8x128xf32> -> vector<8x128xf32>
    %310 = arith.addf %308, %309 : vector<8x128xf32>
    %311 = vector.extract_strided_slice %310 {offsets = [0, 0], sizes = [8, 32], strides = [1, 1]} : vector<8x128xf32> to vector<8x32xf32>
    %312 = arith.negf %311 : vector<8x32xf32>
    %313 = math.exp %312 : vector<8x32xf32>
    %cst_109 = arith.constant 1.000000e+00 : f32
    %314 = vector.broadcast %cst_109 : f32 to vector<8x32xf32>
    %315 = arith.addf %314, %313 : vector<8x32xf32>
    %316 = arith.divf %314, %315 : vector<8x32xf32>
    %317 = vector.extract_strided_slice %310 {offsets = [0, 32], sizes = [8, 32], strides = [1, 1]} : vector<8x128xf32> to vector<8x32xf32>
    %318 = arith.negf %317 : vector<8x32xf32>
    %319 = math.exp %318 : vector<8x32xf32>
    %cst_110 = arith.constant 1.000000e+00 : f32
    %320 = vector.broadcast %cst_110 : f32 to vector<8x32xf32>
    %321 = arith.addf %320, %319 : vector<8x32xf32>
    %322 = arith.divf %320, %321 : vector<8x32xf32>
    %323 = vector.extract_strided_slice %310 {offsets = [0, 64], sizes = [8, 32], strides = [1, 1]} : vector<8x128xf32> to vector<8x32xf32>
    %324 = math.tanh %323 : vector<8x32xf32>
    %325 = vector.extract_strided_slice %310 {offsets = [0, 96], sizes = [8, 32], strides = [1, 1]} : vector<8x128xf32> to vector<8x32xf32>
    %326 = arith.negf %325 : vector<8x32xf32>
    %327 = math.exp %326 : vector<8x32xf32>
    %cst_111 = arith.constant 1.000000e+00 : f32
    %328 = vector.broadcast %cst_111 : f32 to vector<8x32xf32>
    %329 = arith.addf %328, %327 : vector<8x32xf32>
    %330 = arith.divf %328, %329 : vector<8x32xf32>
    %331 = arith.mulf %322, %305 : vector<8x32xf32>
    %332 = arith.mulf %316, %324 : vector<8x32xf32>
    %333 = arith.addf %331, %332 : vector<8x32xf32>
    %334 = math.tanh %333 : vector<8x32xf32>
    %335 = arith.mulf %330, %334 : vector<8x32xf32>
    %336 = arith.index_cast %c0_i32_105 : i32 to index
    %c0_112 = arith.constant 0 : index
    %c0_113 = arith.constant 0 : index
    %337 = vector.load %arg16[%336, %c0_112, %c0_113] : memref<8x8x32xf32, #tpu.memory_space<vmem>>, vector<1x8x32xf32>
    %338 = vector.shape_cast %337 : vector<1x8x32xf32> to vector<8x32xf32>
    %339 = vector.shape_cast %335 : vector<8x32xf32> to vector<1x8x32xf32>
    tpu.vector_store %arg16[%336, %c0_112, %c0_113], %339 {strides = array<i32>} : memref<8x8x32xf32, #tpu.memory_space<vmem>>, vector<1x8x32xf32>,
    %c1_i32_114 = arith.constant 1 : i32
    %340 = arith.index_cast %c1_i32_114 : i32 to index
    %c0_115 = arith.constant 0 : index
    %c0_116 = arith.constant 0 : index
    %341 = vector.load %arg15[%340, %c0_115, %c0_116] : memref<8x8x128xf32, #tpu.memory_space<vmem>>, vector<1x8x128xf32>
    %342 = vector.shape_cast %341 : vector<1x8x128xf32> to vector<8x128xf32>
    %cst_117 = arith.constant dense<0.000000e+00> : vector<8x128xf32>
    %343 = tpu.matmul %335, %301, %cst_117 {dimension_numbers = #tpu.dot_dimension_numbers<[1], [0], [0], [1], [0, 0, 1, 1], [], []>} : vector<8x32xf32>, vector<32x128xf32>, vector<8x128xf32> -> vector<8x128xf32>
    %344 = arith.addf %342, %343 : vector<8x128xf32>
    %345 = vector.extract_strided_slice %344 {offsets = [0, 0], sizes = [8, 32], strides = [1, 1]} : vector<8x128xf32> to vector<8x32xf32>
    %346 = arith.negf %345 : vector<8x32xf32>
    %347 = math.exp %346 : vector<8x32xf32>
    %cst_118 = arith.constant 1.000000e+00 : f32
    %348 = vector.broadcast %cst_118 : f32 to vector<8x32xf32>
    %349 = arith.addf %348, %347 : vector<8x32xf32>
    %350 = arith.divf %348, %349 : vector<8x32xf32>
    %351 = vector.extract_strided_slice %344 {offsets = [0, 32], sizes = [8, 32], strides = [1, 1]} : vector<8x128xf32> to vector<8x32xf32>
    %352 = arith.negf %351 : vector<8x32xf32>
    %353 = math.exp %352 : vector<8x32xf32>
    %cst_119 = arith.constant 1.000000e+00 : f32
    %354 = vector.broadcast %cst_119 : f32 to vector<8x32xf32>
    %355 = arith.addf %354, %353 : vector<8x32xf32>
    %356 = arith.divf %354, %355 : vector<8x32xf32>
    %357 = vector.extract_strided_slice %344 {offsets = [0, 64], sizes = [8, 32], strides = [1, 1]} : vector<8x128xf32> to vector<8x32xf32>
    %358 = math.tanh %357 : vector<8x32xf32>
    %359 = vector.extract_strided_slice %344 {offsets = [0, 96], sizes = [8, 32], strides = [1, 1]} : vector<8x128xf32> to vector<8x32xf32>
    %360 = arith.negf %359 : vector<8x32xf32>
    %361 = math.exp %360 : vector<8x32xf32>
    %cst_120 = arith.constant 1.000000e+00 : f32
    %362 = vector.broadcast %cst_120 : f32 to vector<8x32xf32>
    %363 = arith.addf %362, %361 : vector<8x32xf32>
    %364 = arith.divf %362, %363 : vector<8x32xf32>
    %365 = arith.mulf %356, %333 : vector<8x32xf32>
    %366 = arith.mulf %350, %358 : vector<8x32xf32>
    %367 = arith.addf %365, %366 : vector<8x32xf32>
    %368 = math.tanh %367 : vector<8x32xf32>
    %369 = arith.mulf %364, %368 : vector<8x32xf32>
    %370 = arith.index_cast %c1_i32_114 : i32 to index
    %c0_121 = arith.constant 0 : index
    %c0_122 = arith.constant 0 : index
    %371 = vector.load %arg16[%370, %c0_121, %c0_122] : memref<8x8x32xf32, #tpu.memory_space<vmem>>, vector<1x8x32xf32>
    %372 = vector.shape_cast %371 : vector<1x8x32xf32> to vector<8x32xf32>
    %373 = vector.shape_cast %369 : vector<8x32xf32> to vector<1x8x32xf32>
    tpu.vector_store %arg16[%370, %c0_121, %c0_122], %373 {strides = array<i32>} : memref<8x8x32xf32, #tpu.memory_space<vmem>>, vector<1x8x32xf32>,
    %c2_i32_123 = arith.constant 2 : i32
    %374 = arith.index_cast %c2_i32_123 : i32 to index
    %c0_124 = arith.constant 0 : index
    %c0_125 = arith.constant 0 : index
    %375 = vector.load %arg15[%374, %c0_124, %c0_125] : memref<8x8x128xf32, #tpu.memory_space<vmem>>, vector<1x8x128xf32>
    %376 = vector.shape_cast %375 : vector<1x8x128xf32> to vector<8x128xf32>
    %cst_126 = arith.constant dense<0.000000e+00> : vector<8x128xf32>
    %377 = tpu.matmul %369, %301, %cst_126 {dimension_numbers = #tpu.dot_dimension_numbers<[1], [0], [0], [1], [0, 0, 1, 1], [], []>} : vector<8x32xf32>, vector<32x128xf32>, vector<8x128xf32> -> vector<8x128xf32>
    %378 = arith.addf %376, %377 : vector<8x128xf32>
    %379 = vector.extract_strided_slice %378 {offsets = [0, 0], sizes = [8, 32], strides = [1, 1]} : vector<8x128xf32> to vector<8x32xf32>
    %380 = arith.negf %379 : vector<8x32xf32>
    %381 = math.exp %380 : vector<8x32xf32>
    %cst_127 = arith.constant 1.000000e+00 : f32
    %382 = vector.broadcast %cst_127 : f32 to vector<8x32xf32>
    %383 = arith.addf %382, %381 : vector<8x32xf32>
    %384 = arith.divf %382, %383 : vector<8x32xf32>
    %385 = vector.extract_strided_slice %378 {offsets = [0, 32], sizes = [8, 32], strides = [1, 1]} : vector<8x128xf32> to vector<8x32xf32>
    %386 = arith.negf %385 : vector<8x32xf32>
    %387 = math.exp %386 : vector<8x32xf32>
    %cst_128 = arith.constant 1.000000e+00 : f32
    %388 = vector.broadcast %cst_128 : f32 to vector<8x32xf32>
    %389 = arith.addf %388, %387 : vector<8x32xf32>
    %390 = arith.divf %388, %389 : vector<8x32xf32>
    %391 = vector.extract_strided_slice %378 {offsets = [0, 64], sizes = [8, 32], strides = [1, 1]} : vector<8x128xf32> to vector<8x32xf32>
    %392 = math.tanh %391 : vector<8x32xf32>
    %393 = vector.extract_strided_slice %378 {offsets = [0, 96], sizes = [8, 32], strides = [1, 1]} : vector<8x128xf32> to vector<8x32xf32>
    %394 = arith.negf %393 : vector<8x32xf32>
    %395 = math.exp %394 : vector<8x32xf32>
    %cst_129 = arith.constant 1.000000e+00 : f32
    %396 = vector.broadcast %cst_129 : f32 to vector<8x32xf32>
    %397 = arith.addf %396, %395 : vector<8x32xf32>
    %398 = arith.divf %396, %397 : vector<8x32xf32>
    %399 = arith.mulf %390, %367 : vector<8x32xf32>
    %400 = arith.mulf %384, %392 : vector<8x32xf32>
    %401 = arith.addf %399, %400 : vector<8x32xf32>
    %402 = math.tanh %401 : vector<8x32xf32>
    %403 = arith.mulf %398, %402 : vector<8x32xf32>
    %404 = arith.index_cast %c2_i32_123 : i32 to index
    %c0_130 = arith.constant 0 : index
    %c0_131 = arith.constant 0 : index
    %405 = vector.load %arg16[%404, %c0_130, %c0_131] : memref<8x8x32xf32, #tpu.memory_space<vmem>>, vector<1x8x32xf32>
    %406 = vector.shape_cast %405 : vector<1x8x32xf32> to vector<8x32xf32>
    %407 = vector.shape_cast %403 : vector<8x32xf32> to vector<1x8x32xf32>
    tpu.vector_store %arg16[%404, %c0_130, %c0_131], %407 {strides = array<i32>} : memref<8x8x32xf32, #tpu.memory_space<vmem>>, vector<1x8x32xf32>,
    %c3_i32_132 = arith.constant 3 : i32
    %408 = arith.index_cast %c3_i32_132 : i32 to index
    %c0_133 = arith.constant 0 : index
    %c0_134 = arith.constant 0 : index
    %409 = vector.load %arg15[%408, %c0_133, %c0_134] : memref<8x8x128xf32, #tpu.memory_space<vmem>>, vector<1x8x128xf32>
    %410 = vector.shape_cast %409 : vector<1x8x128xf32> to vector<8x128xf32>
    %cst_135 = arith.constant dense<0.000000e+00> : vector<8x128xf32>
    %411 = tpu.matmul %403, %301, %cst_135 {dimension_numbers = #tpu.dot_dimension_numbers<[1], [0], [0], [1], [0, 0, 1, 1], [], []>} : vector<8x32xf32>, vector<32x128xf32>, vector<8x128xf32> -> vector<8x128xf32>
    %412 = arith.addf %410, %411 : vector<8x128xf32>
    %413 = vector.extract_strided_slice %412 {offsets = [0, 0], sizes = [8, 32], strides = [1, 1]} : vector<8x128xf32> to vector<8x32xf32>
    %414 = arith.negf %413 : vector<8x32xf32>
    %415 = math.exp %414 : vector<8x32xf32>
    %cst_136 = arith.constant 1.000000e+00 : f32
    %416 = vector.broadcast %cst_136 : f32 to vector<8x32xf32>
    %417 = arith.addf %416, %415 : vector<8x32xf32>
    %418 = arith.divf %416, %417 : vector<8x32xf32>
    %419 = vector.extract_strided_slice %412 {offsets = [0, 32], sizes = [8, 32], strides = [1, 1]} : vector<8x128xf32> to vector<8x32xf32>
    %420 = arith.negf %419 : vector<8x32xf32>
    %421 = math.exp %420 : vector<8x32xf32>
    %cst_137 = arith.constant 1.000000e+00 : f32
    %422 = vector.broadcast %cst_137 : f32 to vector<8x32xf32>
    %423 = arith.addf %422, %421 : vector<8x32xf32>
    %424 = arith.divf %422, %423 : vector<8x32xf32>
    %425 = vector.extract_strided_slice %412 {offsets = [0, 64], sizes = [8, 32], strides = [1, 1]} : vector<8x128xf32> to vector<8x32xf32>
    %426 = math.tanh %425 : vector<8x32xf32>
    %427 = vector.extract_strided_slice %412 {offsets = [0, 96], sizes = [8, 32], strides = [1, 1]} : vector<8x128xf32> to vector<8x32xf32>
    %428 = arith.negf %427 : vector<8x32xf32>
    %429 = math.exp %428 : vector<8x32xf32>
    %cst_138 = arith.constant 1.000000e+00 : f32
    %430 = vector.broadcast %cst_138 : f32 to vector<8x32xf32>
    %431 = arith.addf %430, %429 : vector<8x32xf32>
    %432 = arith.divf %430, %431 : vector<8x32xf32>
    %433 = arith.mulf %424, %401 : vector<8x32xf32>
    %434 = arith.mulf %418, %426 : vector<8x32xf32>
    %435 = arith.addf %433, %434 : vector<8x32xf32>
    %436 = math.tanh %435 : vector<8x32xf32>
    %437 = arith.mulf %432, %436 : vector<8x32xf32>
    %438 = arith.index_cast %c3_i32_132 : i32 to index
    %c0_139 = arith.constant 0 : index
    %c0_140 = arith.constant 0 : index
    %439 = vector.load %arg16[%438, %c0_139, %c0_140] : memref<8x8x32xf32, #tpu.memory_space<vmem>>, vector<1x8x32xf32>
    %440 = vector.shape_cast %439 : vector<1x8x32xf32> to vector<8x32xf32>
    %441 = vector.shape_cast %437 : vector<8x32xf32> to vector<1x8x32xf32>
    tpu.vector_store %arg16[%438, %c0_139, %c0_140], %441 {strides = array<i32>} : memref<8x8x32xf32, #tpu.memory_space<vmem>>, vector<1x8x32xf32>,
    %c4_i32_141 = arith.constant 4 : i32
    %442 = arith.index_cast %c4_i32_141 : i32 to index
    %c0_142 = arith.constant 0 : index
    %c0_143 = arith.constant 0 : index
    %443 = vector.load %arg15[%442, %c0_142, %c0_143] : memref<8x8x128xf32, #tpu.memory_space<vmem>>, vector<1x8x128xf32>
    %444 = vector.shape_cast %443 : vector<1x8x128xf32> to vector<8x128xf32>
    %cst_144 = arith.constant dense<0.000000e+00> : vector<8x128xf32>
    %445 = tpu.matmul %437, %301, %cst_144 {dimension_numbers = #tpu.dot_dimension_numbers<[1], [0], [0], [1], [0, 0, 1, 1], [], []>} : vector<8x32xf32>, vector<32x128xf32>, vector<8x128xf32> -> vector<8x128xf32>
    %446 = arith.addf %444, %445 : vector<8x128xf32>
    %447 = vector.extract_strided_slice %446 {offsets = [0, 0], sizes = [8, 32], strides = [1, 1]} : vector<8x128xf32> to vector<8x32xf32>
    %448 = arith.negf %447 : vector<8x32xf32>
    %449 = math.exp %448 : vector<8x32xf32>
    %cst_145 = arith.constant 1.000000e+00 : f32
    %450 = vector.broadcast %cst_145 : f32 to vector<8x32xf32>
    %451 = arith.addf %450, %449 : vector<8x32xf32>
    %452 = arith.divf %450, %451 : vector<8x32xf32>
    %453 = vector.extract_strided_slice %446 {offsets = [0, 32], sizes = [8, 32], strides = [1, 1]} : vector<8x128xf32> to vector<8x32xf32>
    %454 = arith.negf %453 : vector<8x32xf32>
    %455 = math.exp %454 : vector<8x32xf32>
    %cst_146 = arith.constant 1.000000e+00 : f32
    %456 = vector.broadcast %cst_146 : f32 to vector<8x32xf32>
    %457 = arith.addf %456, %455 : vector<8x32xf32>
    %458 = arith.divf %456, %457 : vector<8x32xf32>
    %459 = vector.extract_strided_slice %446 {offsets = [0, 64], sizes = [8, 32], strides = [1, 1]} : vector<8x128xf32> to vector<8x32xf32>
    %460 = math.tanh %459 : vector<8x32xf32>
    %461 = vector.extract_strided_slice %446 {offsets = [0, 96], sizes = [8, 32], strides = [1, 1]} : vector<8x128xf32> to vector<8x32xf32>
    %462 = arith.negf %461 : vector<8x32xf32>
    %463 = math.exp %462 : vector<8x32xf32>
    %cst_147 = arith.constant 1.000000e+00 : f32
    %464 = vector.broadcast %cst_147 : f32 to vector<8x32xf32>
    %465 = arith.addf %464, %463 : vector<8x32xf32>
    %466 = arith.divf %464, %465 : vector<8x32xf32>
    %467 = arith.mulf %458, %435 : vector<8x32xf32>
    %468 = arith.mulf %452, %460 : vector<8x32xf32>
    %469 = arith.addf %467, %468 : vector<8x32xf32>
    %470 = math.tanh %469 : vector<8x32xf32>
    %471 = arith.mulf %466, %470 : vector<8x32xf32>
    %472 = arith.index_cast %c4_i32_141 : i32 to index
    %c0_148 = arith.constant 0 : index
    %c0_149 = arith.constant 0 : index
    %473 = vector.load %arg16[%472, %c0_148, %c0_149] : memref<8x8x32xf32, #tpu.memory_space<vmem>>, vector<1x8x32xf32>
    %474 = vector.shape_cast %473 : vector<1x8x32xf32> to vector<8x32xf32>
    %475 = vector.shape_cast %471 : vector<8x32xf32> to vector<1x8x32xf32>
    tpu.vector_store %arg16[%472, %c0_148, %c0_149], %475 {strides = array<i32>} : memref<8x8x32xf32, #tpu.memory_space<vmem>>, vector<1x8x32xf32>,
    %c5_i32_150 = arith.constant 5 : i32
    %476 = arith.index_cast %c5_i32_150 : i32 to index
    %c0_151 = arith.constant 0 : index
    %c0_152 = arith.constant 0 : index
    %477 = vector.load %arg15[%476, %c0_151, %c0_152] : memref<8x8x128xf32, #tpu.memory_space<vmem>>, vector<1x8x128xf32>
    %478 = vector.shape_cast %477 : vector<1x8x128xf32> to vector<8x128xf32>
    %cst_153 = arith.constant dense<0.000000e+00> : vector<8x128xf32>
    %479 = tpu.matmul %471, %301, %cst_153 {dimension_numbers = #tpu.dot_dimension_numbers<[1], [0], [0], [1], [0, 0, 1, 1], [], []>} : vector<8x32xf32>, vector<32x128xf32>, vector<8x128xf32> -> vector<8x128xf32>
    %480 = arith.addf %478, %479 : vector<8x128xf32>
    %481 = vector.extract_strided_slice %480 {offsets = [0, 0], sizes = [8, 32], strides = [1, 1]} : vector<8x128xf32> to vector<8x32xf32>
    %482 = arith.negf %481 : vector<8x32xf32>
    %483 = math.exp %482 : vector<8x32xf32>
    %cst_154 = arith.constant 1.000000e+00 : f32
    %484 = vector.broadcast %cst_154 : f32 to vector<8x32xf32>
    %485 = arith.addf %484, %483 : vector<8x32xf32>
    %486 = arith.divf %484, %485 : vector<8x32xf32>
    %487 = vector.extract_strided_slice %480 {offsets = [0, 32], sizes = [8, 32], strides = [1, 1]} : vector<8x128xf32> to vector<8x32xf32>
    %488 = arith.negf %487 : vector<8x32xf32>
    %489 = math.exp %488 : vector<8x32xf32>
    %cst_155 = arith.constant 1.000000e+00 : f32
    %490 = vector.broadcast %cst_155 : f32 to vector<8x32xf32>
    %491 = arith.addf %490, %489 : vector<8x32xf32>
    %492 = arith.divf %490, %491 : vector<8x32xf32>
    %493 = vector.extract_strided_slice %480 {offsets = [0, 64], sizes = [8, 32], strides = [1, 1]} : vector<8x128xf32> to vector<8x32xf32>
    %494 = math.tanh %493 : vector<8x32xf32>
    %495 = vector.extract_strided_slice %480 {offsets = [0, 96], sizes = [8, 32], strides = [1, 1]} : vector<8x128xf32> to vector<8x32xf32>
    %496 = arith.negf %495 : vector<8x32xf32>
    %497 = math.exp %496 : vector<8x32xf32>
    %cst_156 = arith.constant 1.000000e+00 : f32
    %498 = vector.broadcast %cst_156 : f32 to vector<8x32xf32>
    %499 = arith.addf %498, %497 : vector<8x32xf32>
    %500 = arith.divf %498, %499 : vector<8x32xf32>
    %501 = arith.mulf %492, %469 : vector<8x32xf32>
    %502 = arith.mulf %486, %494 : vector<8x32xf32>
    %503 = arith.addf %501, %502 : vector<8x32xf32>
    %504 = math.tanh %503 : vector<8x32xf32>
    %505 = arith.mulf %500, %504 : vector<8x32xf32>
    %506 = arith.index_cast %c5_i32_150 : i32 to index
    %c0_157 = arith.constant 0 : index
    %c0_158 = arith.constant 0 : index
    %507 = vector.load %arg16[%506, %c0_157, %c0_158] : memref<8x8x32xf32, #tpu.memory_space<vmem>>, vector<1x8x32xf32>
    %508 = vector.shape_cast %507 : vector<1x8x32xf32> to vector<8x32xf32>
    %509 = vector.shape_cast %505 : vector<8x32xf32> to vector<1x8x32xf32>
    tpu.vector_store %arg16[%506, %c0_157, %c0_158], %509 {strides = array<i32>} : memref<8x8x32xf32, #tpu.memory_space<vmem>>, vector<1x8x32xf32>,
    %c6_i32_159 = arith.constant 6 : i32
    %510 = arith.index_cast %c6_i32_159 : i32 to index
    %c0_160 = arith.constant 0 : index
    %c0_161 = arith.constant 0 : index
    %511 = vector.load %arg15[%510, %c0_160, %c0_161] : memref<8x8x128xf32, #tpu.memory_space<vmem>>, vector<1x8x128xf32>
    %512 = vector.shape_cast %511 : vector<1x8x128xf32> to vector<8x128xf32>
    %cst_162 = arith.constant dense<0.000000e+00> : vector<8x128xf32>
    %513 = tpu.matmul %505, %301, %cst_162 {dimension_numbers = #tpu.dot_dimension_numbers<[1], [0], [0], [1], [0, 0, 1, 1], [], []>} : vector<8x32xf32>, vector<32x128xf32>, vector<8x128xf32> -> vector<8x128xf32>
    %514 = arith.addf %512, %513 : vector<8x128xf32>
    %515 = vector.extract_strided_slice %514 {offsets = [0, 0], sizes = [8, 32], strides = [1, 1]} : vector<8x128xf32> to vector<8x32xf32>
    %516 = arith.negf %515 : vector<8x32xf32>
    %517 = math.exp %516 : vector<8x32xf32>
    %cst_163 = arith.constant 1.000000e+00 : f32
    %518 = vector.broadcast %cst_163 : f32 to vector<8x32xf32>
    %519 = arith.addf %518, %517 : vector<8x32xf32>
    %520 = arith.divf %518, %519 : vector<8x32xf32>
    %521 = vector.extract_strided_slice %514 {offsets = [0, 32], sizes = [8, 32], strides = [1, 1]} : vector<8x128xf32> to vector<8x32xf32>
    %522 = arith.negf %521 : vector<8x32xf32>
    %523 = math.exp %522 : vector<8x32xf32>
    %cst_164 = arith.constant 1.000000e+00 : f32
    %524 = vector.broadcast %cst_164 : f32 to vector<8x32xf32>
    %525 = arith.addf %524, %523 : vector<8x32xf32>
    %526 = arith.divf %524, %525 : vector<8x32xf32>
    %527 = vector.extract_strided_slice %514 {offsets = [0, 64], sizes = [8, 32], strides = [1, 1]} : vector<8x128xf32> to vector<8x32xf32>
    %528 = math.tanh %527 : vector<8x32xf32>
    %529 = vector.extract_strided_slice %514 {offsets = [0, 96], sizes = [8, 32], strides = [1, 1]} : vector<8x128xf32> to vector<8x32xf32>
    %530 = arith.negf %529 : vector<8x32xf32>
    %531 = math.exp %530 : vector<8x32xf32>
    %cst_165 = arith.constant 1.000000e+00 : f32
    %532 = vector.broadcast %cst_165 : f32 to vector<8x32xf32>
    %533 = arith.addf %532, %531 : vector<8x32xf32>
    %534 = arith.divf %532, %533 : vector<8x32xf32>
    %535 = arith.mulf %526, %503 : vector<8x32xf32>
    %536 = arith.mulf %520, %528 : vector<8x32xf32>
    %537 = arith.addf %535, %536 : vector<8x32xf32>
    %538 = math.tanh %537 : vector<8x32xf32>
    %539 = arith.mulf %534, %538 : vector<8x32xf32>
    %540 = arith.index_cast %c6_i32_159 : i32 to index
    %c0_166 = arith.constant 0 : index
    %c0_167 = arith.constant 0 : index
    %541 = vector.load %arg16[%540, %c0_166, %c0_167] : memref<8x8x32xf32, #tpu.memory_space<vmem>>, vector<1x8x32xf32>
    %542 = vector.shape_cast %541 : vector<1x8x32xf32> to vector<8x32xf32>
    %543 = vector.shape_cast %539 : vector<8x32xf32> to vector<1x8x32xf32>
    tpu.vector_store %arg16[%540, %c0_166, %c0_167], %543 {strides = array<i32>} : memref<8x8x32xf32, #tpu.memory_space<vmem>>, vector<1x8x32xf32>,
    %c7_i32_168 = arith.constant 7 : i32
    %544 = arith.index_cast %c7_i32_168 : i32 to index
    %c0_169 = arith.constant 0 : index
    %c0_170 = arith.constant 0 : index
    %545 = vector.load %arg15[%544, %c0_169, %c0_170] : memref<8x8x128xf32, #tpu.memory_space<vmem>>, vector<1x8x128xf32>
    %546 = vector.shape_cast %545 : vector<1x8x128xf32> to vector<8x128xf32>
    %cst_171 = arith.constant dense<0.000000e+00> : vector<8x128xf32>
    %547 = tpu.matmul %539, %301, %cst_171 {dimension_numbers = #tpu.dot_dimension_numbers<[1], [0], [0], [1], [0, 0, 1, 1], [], []>} : vector<8x32xf32>, vector<32x128xf32>, vector<8x128xf32> -> vector<8x128xf32>
    %548 = arith.addf %546, %547 : vector<8x128xf32>
    %549 = vector.extract_strided_slice %548 {offsets = [0, 0], sizes = [8, 32], strides = [1, 1]} : vector<8x128xf32> to vector<8x32xf32>
    %550 = arith.negf %549 : vector<8x32xf32>
    %551 = math.exp %550 : vector<8x32xf32>
    %cst_172 = arith.constant 1.000000e+00 : f32
    %552 = vector.broadcast %cst_172 : f32 to vector<8x32xf32>
    %553 = arith.addf %552, %551 : vector<8x32xf32>
    %554 = arith.divf %552, %553 : vector<8x32xf32>
    %555 = vector.extract_strided_slice %548 {offsets = [0, 32], sizes = [8, 32], strides = [1, 1]} : vector<8x128xf32> to vector<8x32xf32>
    %556 = arith.negf %555 : vector<8x32xf32>
    %557 = math.exp %556 : vector<8x32xf32>
    %cst_173 = arith.constant 1.000000e+00 : f32
    %558 = vector.broadcast %cst_173 : f32 to vector<8x32xf32>
    %559 = arith.addf %558, %557 : vector<8x32xf32>
    %560 = arith.divf %558, %559 : vector<8x32xf32>
    %561 = vector.extract_strided_slice %548 {offsets = [0, 64], sizes = [8, 32], strides = [1, 1]} : vector<8x128xf32> to vector<8x32xf32>
    %562 = math.tanh %561 : vector<8x32xf32>
    %563 = vector.extract_strided_slice %548 {offsets = [0, 96], sizes = [8, 32], strides = [1, 1]} : vector<8x128xf32> to vector<8x32xf32>
    %564 = arith.negf %563 : vector<8x32xf32>
    %565 = math.exp %564 : vector<8x32xf32>
    %cst_174 = arith.constant 1.000000e+00 : f32
    %566 = vector.broadcast %cst_174 : f32 to vector<8x32xf32>
    %567 = arith.addf %566, %565 : vector<8x32xf32>
    %568 = arith.divf %566, %567 : vector<8x32xf32>
    %569 = arith.mulf %560, %537 : vector<8x32xf32>
    %570 = arith.mulf %554, %562 : vector<8x32xf32>
    %571 = arith.addf %569, %570 : vector<8x32xf32>
    %572 = math.tanh %571 : vector<8x32xf32>
    %573 = arith.mulf %568, %572 : vector<8x32xf32>
    %574 = arith.index_cast %c7_i32_168 : i32 to index
    %c0_175 = arith.constant 0 : index
    %c0_176 = arith.constant 0 : index
    %575 = vector.load %arg16[%574, %c0_175, %c0_176] : memref<8x8x32xf32, #tpu.memory_space<vmem>>, vector<1x8x32xf32>
    %576 = vector.shape_cast %575 : vector<1x8x32xf32> to vector<8x32xf32>
    %577 = vector.shape_cast %573 : vector<8x32xf32> to vector<1x8x32xf32>
    tpu.vector_store %arg16[%574, %c0_175, %c0_176], %577 {strides = array<i32>} : memref<8x8x32xf32, #tpu.memory_space<vmem>>, vector<1x8x32xf32>,
    %c8_i32_177 = arith.constant 8 : i32
    %c1_178 = arith.constant 1 : index
    %c0_179 = arith.constant 0 : index
    %c0_180 = arith.constant 0 : index
    %578 = vector.load %arg13[%c1_178, %c0_179, %c0_180] : memref<2x8x32xf32, #tpu.memory_space<vmem>>, vector<1x8x32xf32>
    %579 = vector.shape_cast %578 : vector<1x8x32xf32> to vector<8x32xf32>
    %580 = vector.shape_cast %573 : vector<8x32xf32> to vector<1x8x32xf32>
    tpu.vector_store %arg13[%c1_178, %c0_179, %c0_180], %580 {strides = array<i32>} : memref<2x8x32xf32, #tpu.memory_space<vmem>>, vector<1x8x32xf32>,
    %c1_181 = arith.constant 1 : index
    %c0_182 = arith.constant 0 : index
    %c0_183 = arith.constant 0 : index
    %581 = vector.load %arg14[%c1_181, %c0_182, %c0_183] : memref<2x8x32xf32, #tpu.memory_space<vmem>>, vector<1x8x32xf32>
    %582 = vector.shape_cast %581 : vector<1x8x32xf32> to vector<8x32xf32>
    %583 = vector.shape_cast %571 : vector<8x32xf32> to vector<1x8x32xf32>
    tpu.vector_store %arg14[%c1_181, %c0_182, %c0_183], %583 {strides = array<i32>} : memref<2x8x32xf32, #tpu.memory_space<vmem>>, vector<1x8x32xf32>,
    %c0_184 = arith.constant 0 : index
    %c0_185 = arith.constant 0 : index
    %c0_186 = arith.constant 0 : index
    %584 = vector.load %arg16[%c0_184, %c0_185, %c0_186] : memref<8x8x32xf32, #tpu.memory_space<vmem>>, vector<8x8x32xf32>
    %c0_187 = arith.constant 0 : index
    %c0_188 = arith.constant 0 : index
    %585 = vector.load %arg10[%c0_187, %c0_188] : memref<1x32xf32, #tpu.memory_space<vmem>>, vector<1x32xf32>
    %586 = vector.shape_cast %585 : vector<1x32xf32> to vector<32xf32>
    %587 = vector.shape_cast %586 : vector<32xf32> to vector<1x1x32xf32>
    %588 = vector.broadcast %587 : vector<1x1x32xf32> to vector<8x8x32xf32>
    %589 = arith.mulf %584, %588 : vector<8x8x32xf32>
    %cst_189 = arith.constant dense<0.000000e+00> : vector<8x8xf32>
    %590 = vector.multi_reduction <add>, %589, %cst_189 [2] : vector<8x8x32xf32> to vector<8x8xf32>
    %c0_190 = arith.constant 0 : index
    %c0_191 = arith.constant 0 : index
    %591 = vector.load %arg11[%c0_190, %c0_191] : memref<1x1xf32, #tpu.memory_space<vmem>>, vector<1x1xf32>
    %592 = vector.extract %591[0, 0] : f32 from vector<1x1xf32>
    %593 = vector.broadcast %592 : f32 to vector<8x8xf32>
    %594 = arith.addf %590, %593 : vector<8x8xf32>
    %c0_192 = arith.constant 0 : index
    %c0_193 = arith.constant 0 : index
    %595 = vector.load %arg12[%c0_192, %c0_193] : memref<8x8xf32, #tpu.memory_space<vmem>>, vector<8x8xf32>
    tpu.vector_store %arg12[%c0_192, %c0_193], %594 {strides = array<i32>} : memref<8x8xf32, #tpu.memory_space<vmem>>, vector<8x8xf32>,
    return
  }
  func.func @transform_0(%arg0: i32) -> (i32, i32, i32) {
    %c0_i32 = arith.constant 0 : i32
    %c0_i32_0 = arith.constant 0 : i32
    %c0_i32_1 = arith.constant 0 : i32
    %c0_i32_2 = arith.constant 0 : i32
    return %c0_i32, %c0_i32_0, %c0_i32_1 : i32, i32, i32
  }
  func.func @transform_1(%arg0: i32) -> (i32, i32, i32) {
    %c0_i32 = arith.constant 0 : i32
    %c0_i32_0 = arith.constant 0 : i32
    %c0_i32_1 = arith.constant 0 : i32
    %c0_i32_2 = arith.constant 0 : i32
    return %c0_i32, %c0_i32_0, %c0_i32_1 : i32, i32, i32
  }
  func.func @transform_2(%arg0: i32) -> (i32, i32, i32) {
    %c0_i32 = arith.constant 0 : i32
    %c0_i32_0 = arith.constant 0 : i32
    %c0_i32_1 = arith.constant 0 : i32
    %c0_i32_2 = arith.constant 0 : i32
    return %c0_i32, %c0_i32_0, %c0_i32_1 : i32, i32, i32
  }
  func.func @transform_3(%arg0: i32) -> (i32, i32) {
    %c0_i32 = arith.constant 0 : i32
    %c0_i32_0 = arith.constant 0 : i32
    %c0_i32_1 = arith.constant 0 : i32
    return %c0_i32, %c0_i32_0 : i32, i32
  }
  func.func @transform_4(%arg0: i32) -> (i32, i32) {
    %c0_i32 = arith.constant 0 : i32
    %c0_i32_0 = arith.constant 0 : i32
    %c0_i32_1 = arith.constant 0 : i32
    return %c0_i32, %c0_i32_0 : i32, i32
  }
  func.func @transform_5(%arg0: i32) -> (i32, i32) {
    %c0_i32 = arith.constant 0 : i32
    %c0_i32_0 = arith.constant 0 : i32
    %c0_i32_1 = arith.constant 0 : i32
    return %c0_i32, %c0_i32_0 : i32, i32
  }
  func.func @transform_6(%arg0: i32) -> (i32, i32) {
    %c0_i32 = arith.constant 0 : i32
    %c0_i32_0 = arith.constant 0 : i32
    %c0_i32_1 = arith.constant 0 : i32
    return %c0_i32, %c0_i32_0 : i32, i32
  }
  func.func @transform_7(%arg0: i32) -> (i32, i32) {
    %c0_i32 = arith.constant 0 : i32
    %c0_i32_0 = arith.constant 0 : i32
    %c0_i32_1 = arith.constant 0 : i32
    return %c0_i32, %c0_i32_0 : i32, i32
  }
  func.func @transform_8(%arg0: i32) -> (i32, i32) {
    %c0_i32 = arith.constant 0 : i32
    %c0_i32_0 = arith.constant 0 : i32
    %c0_i32_1 = arith.constant 0 : i32
    return %c0_i32, %c0_i32_0 : i32, i32
  }
  func.func @transform_9(%arg0: i32) -> (i32, i32) {
    %c0_i32 = arith.constant 0 : i32
    %c0_i32_0 = arith.constant 0 : i32
    %c0_i32_1 = arith.constant 0 : i32
    return %c0_i32, %c0_i32_0 : i32, i32
  }
  func.func @transform_10(%arg0: i32) -> (i32, i32) {
    %c0_i32 = arith.constant 0 : i32
    %c0_i32_0 = arith.constant 0 : i32
    %c0_i32_1 = arith.constant 0 : i32
    return %c0_i32, %c0_i32_0 : i32, i32
  }
  func.func @transform_11(%arg0: i32) -> (i32, i32) {
    %c0_i32 = arith.constant 0 : i32
    %c0_i32_0 = arith.constant 0 : i32
    %c0_i32_1 = arith.constant 0 : i32
    return %c0_i32, %c0_i32_0 : i32, i32
  }
  func.func @transform_12(%arg0: i32) -> (i32, i32, i32) {
    %c0_i32 = arith.constant 0 : i32
    %c0_i32_0 = arith.constant 0 : i32
    %c0_i32_1 = arith.constant 0 : i32
    %c0_i32_2 = arith.constant 0 : i32
    return %c0_i32, %c0_i32_0, %c0_i32_1 : i32, i32, i32
  }
  func.func @transform_13(%arg0: i32) -> (i32, i32, i32) {
    %c0_i32 = arith.constant 0 : i32
    %c0_i32_0 = arith.constant 0 : i32
    %c0_i32_1 = arith.constant 0 : i32
    %c0_i32_2 = arith.constant 0 : i32
    return %c0_i32, %c0_i32_0, %c0_i32_1 : i32, i32, i32
  }
}

</mosaic_0001>

<bundles_post_ra>
// kernel: tpu_custom_call.1
= control target key start
LH: loop header
LB: loop body
LE: loop exit
PB: predicated region body
PF: predicated region fallthrough
CT: control target
= control target key end

     0   :  { %s3680_s0 = inlined_call_operand.hbm [shape: f32[8,8,8], index: 0, kind: input, shape index: {}]   ;;  %s3681_s1 = inlined_call_operand.hbm [shape: f32[2,8,32], index: 1, kind: input, shape index: {}]   ;;  %s3682_s2 = inlined_call_operand.hbm [shape: f32[2,8,32], index: 2, kind: input, shape index: {}]   ;;  %s3683_s3 = inlined_call_operand.vmem [shape: f32[8,128], index: 3, kind: input, shape index: {}]   ;;  %s3684_s4 = inlined_call_operand.hbm [shape: f32[32,128], index: 4, kind: input, shape index: {}]   ;;  %s3685_s5 = inlined_call_operand.vmem [shape: f32[1,128], index: 5, kind: input, shape index: {}]   ;;  %s3686_s6 = inlined_call_operand.hbm [shape: f32[32,128], index: 6, kind: input, shape index: {}]   ;;  %s3687_s7 = inlined_call_operand.hbm [shape: f32[32,128], index: 7, kind: input, shape index: {}]   ;;  %s3688_s8 = inlined_call_operand.vmem [shape: f32[1,128], index: 8, kind: input, shape index: {}]   ;;  %s3689_s9 = inlined_call_operand.vmem [shape: f32[1,32], index: 9, kind: input, shape index: {}]   ;;  %s3690_s10 = inlined_call_operand.<no memory space> [shape: f32[1,1], index: 10, kind: input, shape index: {}]   ;;  %s3691_s11 = inlined_call_operand.hbm [shape: f32[8,8], index: 11, kind: output, shape index: {0}]   ;;  %s3692_s12 = inlined_call_operand.hbm [shape: f32[2,8,32], index: 12, kind: output, shape index: {1}]   ;;  %s3693_s13 = inlined_call_operand.hbm [shape: f32[2,8,32], index: 13, kind: output, shape index: {2}]  }
   0x1   :  { %v19_v0 = vstv %s3690_s10 }
   0x2   :  { %20 = vst [vmem:[#allocation4] sm:$0x1] %v19_v0 }
   0x3   :  { %21 = vsyncpa [#allocation6], 0 }
   0x4   :  { %22 = vsyncpa [#allocation9], 0 }
   0x5   :  { %23 = vsyncpa [#allocation12], 0 }
   0x6   :  { %24 = vsyncpa [#allocation15], 0 }
   0x7   :  { %25 = vsyncpa [#allocation7], 0 }
   0x8   :  { %26 = vsyncpa [#allocation18], 0  ;;  %s3126_s27 = smov [#allocation8]   ;;  %s3127_s29 = smov [#allocation11]  }
   0x9   :  { %s44_s28 = sshll.u32 %s3126_s27, 4  ;;  %s70_s30 = sshll.u32 %s3127_s29, 4  ;;  %s45_s28 = int_to_ptr.vmem [resolvable:$true] %s44_s28  ;;  %s3216_s30 = int_to_ptr.vmem [resolvable:$true] %s70_s30 }
   0xa   :  { %s2916_s16 = scalar_lea.hbm %s3681_s1, 256 }
   0xb   :  { %p2917_p0 = scmp.ne.s32.totalorder %s3681_s1, %s2916_s16  ;;  %p2920_p1 = scmp.lt.u32.totalorder %s2916_s16, %s3681_s1 }
   0xd   :  { %p2922_p2 = pnand %p2920_p1, %p2917_p0 }
   0xf   :  { %2925 = shalt.err (!%p2922_p2)
}
  0x10   :  { %s2926_s20 = scalar_lea.vmem %s45_s28, 256  ;;  %p2931_p4 = scmp.lt.s32.totalorder %s45_s28, %s45_s28 }
  0x11   :  { %p2927_p3 = scmp.ne.s32.totalorder %s45_s28, %s2926_s20  ;;  %p2932_p5 = scmp.lt.s32.totalorder %s2926_s20, %s2926_s20 }
  0x13   :  { %p2933_p6 = por %p2932_p5, %p2931_p4 }
  0x15   :  { %p2934_p7 = pnand %p2933_p6, %p2927_p3 }
  0x17   :  { %2937 = shalt.err (!%p2934_p7)
}
  0x18   :  { %s3128_s21 = smov 128   ;;  %s3129_s22 = smov 8  }
  0x19   :  { %50 = dma.hbm_to_vmem [thread:$0]  %s3681_s1, 256, %s45_s28, [#allocation9], %s3128_s21, %s3128_s21, %s3129_s22  }
  0x1a   :  { %s2938_s27 = scalar_lea.hbm %s3684_s4, 512 }
  0x1b   :  { %p2939_p8 = scmp.ne.s32.totalorder %s3684_s4, %s2938_s27  ;;  %p2942_p9 = scmp.lt.u32.totalorder %s2938_s27, %s3684_s4 }
  0x1d   :  { %p2944_p10 = pnand %p2942_p9, %p2939_p8 }
  0x1f   :  { %2947 = shalt.err (!%p2944_p10)
}
  0x20   :  { %s2948_s17 = scalar_lea.vmem %s3216_s30, 512  ;;  %p2953_p12 = scmp.lt.s32.totalorder %s3216_s30, %s3216_s30 }
  0x21   :  { %p2949_p11 = scmp.ne.s32.totalorder %s3216_s30, %s2948_s17  ;;  %p2954_p13 = scmp.lt.s32.totalorder %s2948_s17, %s2948_s17 }
  0x23   :  { %p2955_p0 = por %p2954_p13, %p2953_p12 }
  0x25   :  { %p2956_p1 = pnand %p2955_p0, %p2949_p11 }
  0x27   :  { %2959 = shalt.err (!%p2956_p1)
}
  0x28   :  { %76 = dma.hbm_to_vmem [thread:$0]  %s3684_s4, 512, %s3216_s30, [#allocation12], %s3128_s21, %s3128_s21, %s3129_s22  }
  0x29   :  { %s3130_s10 = smov [#allocation5]   ;;  %s3131_s19 = smov [#allocation10]  }
  0x2a   :  { %s32_s18 = sshll.u32 %s3130_s10, 4  ;;  %s56_s20 = sshll.u32 %s3131_s19, 4  ;;  %s33_s18 = int_to_ptr.vmem [resolvable:$true] %s32_s18  ;;  %s3253_s20 = int_to_ptr.vmem [resolvable:$true] %s56_s20 }
  0x2b   :  { %s2960_s25 = scalar_lea.hbm %s3680_s0, 1024 }
  0x2c   :  { %p2961_p2 = scmp.ne.s32.totalorder %s3680_s0, %s2960_s25  ;;  %p2964_p3 = scmp.lt.u32.totalorder %s2960_s25, %s3680_s0 }
  0x2e   :  { %p2966_p4 = pnand %p2964_p3, %p2961_p2 }
  0x30   :  { %2969 = shalt.err (!%p2966_p4)
}
  0x31   :  { %s2970_s4 = scalar_lea.vmem %s33_s18, 1024  ;;  %p2975_p6 = scmp.lt.s32.totalorder %s33_s18, %s33_s18 }
  0x32   :  { %p2971_p5 = scmp.ne.s32.totalorder %s33_s18, %s2970_s4  ;;  %p2976_p7 = scmp.lt.s32.totalorder %s2970_s4, %s2970_s4 }
  0x34   :  { %p2977_p8 = por %p2976_p7, %p2975_p6 }
  0x36   :  { %p2978_p9 = pnand %p2977_p8, %p2971_p5 }
  0x38   :  { %2981 = shalt.err (!%p2978_p9)
}
  0x39   :  { %38 = dma.hbm_to_vmem [thread:$0]  %s3680_s0, 1024, %s33_s18, [#allocation6], %s3128_s21, %s3128_s21, %s3129_s22  }
  0x3a   :  { %s2982_s1 = scalar_lea.hbm %s3682_s2, 256 }
  0x3b   :  { %p2983_p10 = scmp.ne.s32.totalorder %s3682_s2, %s2982_s1  ;;  %p2986_p11 = scmp.lt.u32.totalorder %s2982_s1, %s3682_s2 }
  0x3d   :  { %p2988_p12 = pnand %p2986_p11, %p2983_p10 }
  0x3f   :  { %2991 = shalt.err (!%p2988_p12)
}
  0x40   :  { %s2992_s24 = scalar_lea.vmem %s3253_s20, 256  ;;  %p2997_p0 = scmp.lt.s32.totalorder %s3253_s20, %s3253_s20 }
  0x41   :  { %p2993_p13 = scmp.ne.s32.totalorder %s3253_s20, %s2992_s24  ;;  %p2998_p1 = scmp.lt.s32.totalorder %s2992_s24, %s2992_s24 }
  0x43   :  { %p2999_p2 = por %p2998_p1, %p2997_p0 }
  0x45   :  { %p3000_p3 = pnand %p2999_p2, %p2993_p13 }
  0x47   :  { %3003 = shalt.err (!%p3000_p3)
}
  0x48   :  { %62 = dma.hbm_to_vmem [thread:$0]  %s3682_s2, 256, %s3253_s20, [#allocation9], %s3128_s21, %s3128_s21, %s3129_s22  }
  0x49   :  { %s3132_s25 = smov [#allocation13]   ;;  %s3133_s27 = smov [#allocation14]  }
  0x4a   :  { %s84_s26 = sshll.u32 %s3132_s25, 4  ;;  %s96_s29 = sshll.u32 %s3133_s27, 4  ;;  %s85_s26 = int_to_ptr.vmem [resolvable:$true] %s84_s26  ;;  %s3290_s29 = int_to_ptr.vmem [resolvable:$true] %s96_s29 }
  0x4b   :  { %s3004_s30 = scalar_lea.hbm %s3686_s6, 512 }
  0x4c   :  { %p3005_p4 = scmp.ne.s32.totalorder %s3686_s6, %s3004_s30  ;;  %p3008_p5 = scmp.lt.u32.totalorder %s3004_s30, %s3686_s6 }
  0x4e   :  { %p3010_p6 = pnand %p3008_p5, %p3005_p4 }
  0x50   :  { %3013 = shalt.err (!%p3010_p6)
}
  0x51   :  { %s3014_s2 = scalar_lea.vmem %s85_s26, 512  ;;  %p3019_p8 = scmp.lt.s32.totalorder %s85_s26, %s85_s26 }
  0x52   :  { %p3015_p7 = scmp.ne.s32.totalorder %s85_s26, %s3014_s2  ;;  %p3020_p9 = scmp.lt.s32.totalorder %s3014_s2, %s3014_s2 }
  0x54   :  { %p3021_p10 = por %p3020_p9, %p3019_p8 }
  0x56   :  { %p3022_p11 = pnand %p3021_p10, %p3015_p7 }
  0x58   :  { %3025 = shalt.err (!%p3022_p11)
}
  0x59   :  { %90 = dma.hbm_to_vmem [thread:$0]  %s3686_s6, 512, %s85_s26, [#allocation12], %s3128_s21, %s3128_s21, %s3129_s22  }
  0x5a   :  { %s3026_s23 = scalar_lea.hbm %s3687_s7, 512 }
  0x5b   :  { %p3027_p12 = scmp.ne.s32.totalorder %s3687_s7, %s3026_s23  ;;  %p3030_p13 = scmp.lt.u32.totalorder %s3026_s23, %s3687_s7 }
  0x5d   :  { %p3032_p0 = pnand %p3030_p13, %p3027_p12 }
  0x5f   :  { %3035 = shalt.err (!%p3032_p0)
}
  0x60   :  { %s3036_s27 = scalar_lea.vmem %s3290_s29, 512  ;;  %p3041_p2 = scmp.lt.s32.totalorder %s3290_s29, %s3290_s29 }
  0x61   :  { %p3037_p1 = scmp.ne.s32.totalorder %s3290_s29, %s3036_s27  ;;  %p3042_p3 = scmp.lt.s32.totalorder %s3036_s27, %s3036_s27 }
  0x63   :  { %p3043_p4 = por %p3042_p3, %p3041_p2 }
  0x65   :  { %p3044_p5 = pnand %p3043_p4, %p3037_p1 }
  0x67   :  { %3047 = shalt.err (!%p3044_p5)
}
  0x68   :  { %102 = dma.hbm_to_vmem [thread:$0]  %s3687_s7, 512, %s3290_s29, [#allocation15], %s3128_s21, %s3128_s21, %s3129_s22  }
  0x69   :  { %3114 = dma.done.wait [#allocation6], 1024  }
  0x6a   :  { %3115 = vsyncadd [#allocation6], 4294966272 }
  0x6b   :  { %3116 = dma.done.wait [#allocation9], 512  }
  0x6c   :  { %3117 = vsyncadd [#allocation9], 4294966784 }
  0x6d   :  { %3118 = dma.done.wait [#allocation12], 1024  }
  0x6e   :  { %3119 = vsyncadd [#allocation12], 4294966272 }
  0x6f   :  { %3120 = dma.done.wait [#allocation15], 512  }
  0x70   :  { %3121 = vsyncadd [#allocation15], 4294966784  ;;  %v3134_v1 = vmov 0.0|0.0   ;;  %vm3135_vm0 = vmmov 0   ;;  %v3136_v2 = vmov 0.0   ;;  %vm143_vm1 = vcmask 64512  }
  0x71   :  { %2665 = vmatprep.subr.bf16.mxu1 %v3134_v1  ;;  %2477 = vmatprep.mubr.msk.f32.mxu1 %vm3135_vm0, %v3136_v2  ;;  %v281_v3 = vld [vmem:[#allocation11] sm:$0xff]  ;;  %v282_v4 = vld [vmem:[#allocation11 + $0x8] sm:$0xff]  ;;  %v283_v9 = vld [vmem:[#allocation11 + $0x10] sm:$0xff]  ;;  %vm288_vm2 = vcmask 261120   ;;  %s3137_s4 = smov 64   ;;  %s3138_s30 = smov 32  }
  0x72   :  { %v135_v5 = vld [vmem:[%s3683_s3] sm:$0xff]  ;;  %v3333_v6 = vpack.c.bf16 %v282_v4, %v281_v3  ;;  %v128_v8 = vld [vmem:[#allocation5 + $0x8] sm:$0xff]  ;;  %v286_v21 = vld [vmem:[#allocation10] sm:$0xff]  ;;  %s3140_s17 = smov [#allocation17]  }
  0x73   :  { %2455 = vmatprep.subr.mxu0 %v135_v5  ;;  %v127_v7 = vld [vmem:[#allocation5] sm:$0xff]  ;;  %v284_v10 = vld [vmem:[#allocation11 + $0x18] sm:$0xff]  ;;  %v129_v50 = vld [vmem:[#allocation5 + $0x10] sm:$0xff]  ;;  %s2269_s1 = sshll.u32 %s3140_s17, 4  ;;  %s2270_s1 = int_to_ptr.vmem [resolvable:$true] %s2269_s1 }
  0x74   :  { %2456 = vmatpush3.msra.mxu0 %v135_v5  ;;  %2457 = vmatprep.mubr.msk.f32.mxu0 %vm143_vm1, %v127_v7  ;;  %v3338_v11 = vpack.c.bf16 %v284_v10, %v283_v9  ;;  %v285_v12 = vld [vmem:[#allocation8] sm:$0xff]  ;;  %v3358_v14 = vld [vmem:[%s3685_s5] ss:$0 sm:$0xff]  ;;  %v132_v53 = vld [vmem:[#allocation5 + $0x28] sm:$0xff]  ;;  %s3048_s2 = scalar_lea.vmem %s2270_s1, 256  ;;  %p3053_p7 = scmp.lt.s32.totalorder %s2270_s1, %s2270_s1 }
  0x75   :  { %2667 = vmatpush3.bf16.msra.mxu1 %v3333_v6  ;;  %2458 = vmatmul.mubr.msk.f32.vlgmr.msra.gmra.mrb[0].mxu0 %vm143_vm1, %v128_v8  ;;  %v130_v51 = vld [vmem:[#allocation5 + $0x18] sm:$0xff]  ;;  %v131_v52 = vld [vmem:[#allocation5 + $0x20] sm:$0xff]  ;;  %v133_v54 = vld [vmem:[#allocation5 + $0x30] sm:$0xff]  ;;  %p3049_p6 = scmp.ne.s32.totalorder %s2270_s1, %s3048_s2  ;;  %p3054_p8 = scmp.lt.s32.totalorder %s3048_s2, %s3048_s2 }
  0x76   :  { %2668 = vmatprep.subr.bf16.mxu1 %v3134_v1  ;;  %2677 = vmatprep.subr.bf16.mxu0 %v3134_v1  ;;  %v134_v55 = vld [vmem:[#allocation5 + $0x38] sm:$0xff] }
  0x77   :  { %2679 = vmatpush3.bf16.msra.mxu0 %v3333_v6  ;;  %2460 = vmatprep.mubr.msk.f32.mxu0 %vm143_vm1, %v129_v50  ;;  %p3055_p9 = por %p3054_p8, %p3053_p7 }
  0x78   :  { %2680 = vmatprep.subr.bf16.mxu0 %v3134_v1 }
  0x79   :  { %2670 = vmatpush3.bf16.msra.mxu1 %v3338_v11  ;;  %2461 = vmatmul.mubr.msk.f32.gmra.mrb[2].mxu0 %vm143_vm1, %v130_v51  ;;  %p3056_p10 = pnand %p3055_p9, %p3049_p6 }
  0x7a   :  { %2671 = vmatprep.subr.bf16.mxu1 %v3134_v1  ;;  %2463 = vmatprep.mubr.msk.f32.mxu0 %vm143_vm1, %v131_v52 }
  0x7b   :  { %2682 = vmatpush3.bf16.msra.mxu0 %v3338_v11 }
  0x7c   :  { %2478 = vmatmul.mubr.msk.f32.vlgmr.msra.gmra.mrb[0].mxu1 %vm288_vm2, %v285_v12  ;;  %2689 = vmatprep.subr.bf16.mxu0 %v3134_v1 }
  0x7d   :  { %2673 = vmatpush3.bf16.msra.mxu1 %v3333_v6  ;;  %2488 = vmatprep.mubr.msk.f32.mxu1 %vm3135_vm0, %v3136_v2 }
  0x7e   :  { %2674 = vmatprep.subr.bf16.mxu1 %v3134_v1  ;;  %2464 = vmatmul.mubr.msk.f32.gmra.mrb[4].mxu0 %vm143_vm1, %v132_v53 }
  0x7f   :  { %2466 = vmatprep.mubr.msk.f32.mxu0 %vm143_vm1, %v133_v54 }
  0x81   :  { %2676 = vmatpush3.bf16.msra.mxu1 %v3338_v11 }
  0x82   :  { %2683 = vmatprep.subr.bf16.mxu1 %v3134_v1  ;;  %2467 = vmatmul.mubr.msk.f32.gmra.mrb[6].mxu0 %vm143_vm1, %v134_v55 }
  0x83   :  { %2499 = vmatprep.mubr.msk.f32.mxu0 %vm3135_vm0, %v3136_v2 }
 0x148   :  { %v2459_v13 = vpop.f32.mrb[0].mxu0 }
 0x149   :  { %v234_v15 = vpop.f32.mrb[1].mxu0  ;;  %v240_v36 = vadd.f32 %v2459_v13, %v3358_v14 }
 0x14a   :  { %v235_v16 = vadd.f32 %v3358_v14, %v234_v15 }
 0x14c   :  { %v2462_v59 = vpop.f32.mrb[2].mxu0 }
 0x14d   :  { %v244_v60 = vpop.f32.mrb[3].mxu0 }
 0x14e   :  { %v245_v4 = vadd.f32 %v3358_v14, %v244_v60 }
 0x14f   :  { %v358_v17 = vpop.f32.mrb[0].mxu1 }
 0x150   :  { %v362_v18 = vadd.f32 %v358_v17, %v235_v16  ;;  %v2479_v19 = vpop.f32.mrb[1].mxu1 }
 0x151   :  { %v3387_v61 = vpop.f32.mrb[4].mxu0 }
 0x152   :  { %2788 = vtanh.f32 %v362_v18  ;;  %v2313_v22 = vmul.f32 -1.442695, %v362_v18  ;;  %v3389_v62 = vpop.f32.mrb[5].mxu0 }
 0x154   :  { %2790 = vpow2.f32 %v2313_v22 }
 0x155   :  { %v3391_v63 = vpop.f32.mrb[6].mxu0 }
 0x156   :  { %v3393_v0 = vpop.f32.mrb[7].mxu0 }
 0x15c   :  { %v2789_v20 = vpop.eup %2788 }
 0x15d   :  { %376 = vrot.lane.b32.xlu0 %v2789_v20, %s3137_s4 }
 0x15e   :  { %v2791_v23 = vpop.eup %2790 }
 0x15f   :  { %v366_v24 = vadd.f32 1.0, %v2791_v23 }
 0x161   :  { %371 = vrot.lane.b32.xlu0 %v286_v21, %s3138_s30  ;;  %2792 = vrcp.f32 %v366_v24 }
 0x16b   :  { %v2793_v25 = vpop.eup %2792 }
 0x1cf   :  { %v377_v26 = vpop.permute.xlu0 %376 }
 0x1d0   :  { %v379_v27 = vmul.f32 %v2793_v25, %v377_v26 }
 0x1d2   :  { %381 = vrot.lane.b32.xlu1 %v379_v27, %s3138_s30 }
 0x1d3   :  { %v372_v28 = vpop.permute.xlu0 %371 }
 0x1d4   :  { %v374_v29 = vmul.f32 %v2793_v25, %v372_v28 }
 0x244   :  { %v382_v30 = vpop.permute.xlu1 %381 }
 0x245   :  { %v384_v31 = vadd.f32 %v382_v30, %v374_v29 }
 0x247   :  { %2794 = vtanh.f32 %v384_v31 }
 0x251   :  { %v2795_v32 = vpop.eup %2794 }
 0x252   :  { %387 = vrot.lane.b32.xlu1 %v2795_v32, %s3137_s4 }
 0x2c4   :  { %v388_v33 = vpop.permute.xlu1 %387 }
 0x2c5   :  { %v390_v34 = vmul.f32 %v2793_v25, %v388_v33  ;;  %v250_v25 = vadd.f32 %v2462_v59, %v3358_v14 }
 0x2c7   :  { %392 = vrot.lane.b32.xlu0 %v390_v34, %s3138_s30 }
 0x339   :  { %v393_v35 = vpop.permute.xlu0 %392 }
 0x33a   :  { %395 = vst.msk [vmem:[#allocation3] sm:$0xff] %vm288_vm2, %v393_v35  ;;  %2489 = vmatmul.mubr.msk.f32.vlgmr.msra.gmra.mrb[2].mxu1 %vm288_vm2, %v393_v35 }
 0x33b   :  { %2685 = vmatpush3.bf16.msra.mxu1 %v3333_v6  ;;  %2510 = vmatprep.mubr.msk.f32.mxu1 %vm3135_vm0, %v3136_v2 }
 0x33c   :  { %2686 = vmatprep.subr.bf16.mxu1 %v3134_v1 }
 0x33f   :  { %2688 = vmatpush3.bf16.msra.mxu1 %v3338_v11 }
 0x340   :  { %2695 = vmatprep.subr.bf16.mxu1 %v3134_v1 }
 0x40d   :  { %v466_v37 = vpop.f32.mrb[2].mxu1 }
 0x40e   :  { %v470_v38 = vadd.f32 %v466_v37, %v240_v36  ;;  %v2490_v39 = vpop.f32.mrb[3].mxu1 }
 0x410   :  { %2796 = vtanh.f32 %v470_v38  ;;  %v2315_v41 = vmul.f32 -1.442695, %v470_v38 }
 0x412   :  { %2798 = vpow2.f32 %v2315_v41 }
 0x41a   :  { %v2797_v40 = vpop.eup %2796 }
 0x41b   :  { %480 = vrot.lane.b32.xlu1 %v2797_v40, %s3137_s4 }
 0x41c   :  { %v2799_v42 = vpop.eup %2798 }
 0x41d   :  { %v474_v43 = vadd.f32 1.0, %v2799_v42 }
 0x41f   :  { %2800 = vrcp.f32 %v474_v43  ;;  %v255_v43 = vadd.f32 %v3358_v14, %v3389_v62  ;;  %v260_v62 = vadd.f32 %v3387_v61, %v3358_v14 }
 0x429   :  { %v2801_v44 = vpop.eup %2800 }
 0x42a   :  { %v478_v47 = vmul.f32 %v2801_v44, %v384_v31 }
 0x48d   :  { %v481_v45 = vpop.permute.xlu1 %480 }
 0x48e   :  { %v483_v46 = vmul.f32 %v2801_v44, %v481_v45 }
 0x490   :  { %485 = vrot.lane.b32.xlu0 %v483_v46, %s3138_s30 }
 0x502   :  { %v486_v48 = vpop.permute.xlu0 %485 }
 0x503   :  { %v488_v49 = vadd.f32 %v486_v48, %v478_v47 }
 0x505   :  { %2802 = vtanh.f32 %v488_v49 }
 0x50f   :  { %v2803_v56 = vpop.eup %2802 }
 0x510   :  { %491 = vrot.lane.b32.xlu1 %v2803_v56, %s3137_s4 }
 0x582   :  { %v492_v57 = vpop.permute.xlu1 %491 }
 0x583   :  { %v494_v58 = vmul.f32 %v2801_v44, %v492_v57 }
 0x585   :  { %496 = vrot.lane.b32.xlu0 %v494_v58, %s3138_s30 }
 0x5f7   :  { %v497_v3 = vpop.permute.xlu0 %496 }
 0x5f8   :  { %500 = vst.msk [vmem:[#allocation3 + $0x8] sm:$0xff] %vm288_vm2, %v497_v3  ;;  %2500 = vmatmul.mubr.msk.f32.vlgmr.msra.gmra.mrb[8].mxu0 %vm288_vm2, %v497_v3 }
 0x5f9   :  { %2691 = vmatpush3.bf16.msra.mxu0 %v3333_v6  ;;  %2521 = vmatprep.mubr.msk.f32.mxu0 %vm3135_vm0, %v3136_v2 }
 0x5fa   :  { %2692 = vmatprep.subr.bf16.mxu0 %v3134_v1 }
 0x5fd   :  { %2694 = vmatpush3.bf16.msra.mxu0 %v3338_v11 }
 0x5fe   :  { %2701 = vmatprep.subr.bf16.mxu0 %v3134_v1 }
 0x6cb   :  { %v571_v5 = vpop.f32.mrb[8].mxu0 }
 0x6cc   :  { %v575_v7 = vadd.f32 %v571_v5, %v245_v4  ;;  %v2501_v8 = vpop.f32.mrb[9].mxu0 }
 0x6ce   :  { %2804 = vtanh.f32 %v575_v7  ;;  %v2317_v10 = vmul.f32 -1.442695, %v575_v7 }
 0x6d0   :  { %2806 = vpow2.f32 %v2317_v10 }
 0x6d8   :  { %v2805_v9 = vpop.eup %2804 }
 0x6d9   :  { %585 = vrot.lane.b32.xlu1 %v2805_v9, %s3137_s4 }
 0x6da   :  { %v2807_v12 = vpop.eup %2806 }
 0x6db   :  { %v579_v13 = vadd.f32 1.0, %v2807_v12 }
 0x6dd   :  { %2808 = vrcp.f32 %v579_v13 }
 0x6e7   :  { %v2809_v15 = vpop.eup %2808 }
 0x6e8   :  { %v583_v18 = vmul.f32 %v2809_v15, %v488_v49 }
 0x74b   :  { %v586_v16 = vpop.permute.xlu1 %585 }
 0x74c   :  { %v588_v17 = vmul.f32 %v2809_v15, %v586_v16  ;;  %v1145_v16 = vld [vmem:[#allocation13] sm:$0xff] }
 0x74e   :  { %590 = vrot.lane.b32.xlu0 %v588_v17, %s3138_s30  ;;  %v1146_v17 = vld [vmem:[#allocation13 + $0x8] sm:$0xff] }
 0x7c0   :  { %v591_v19 = vpop.permute.xlu0 %590 }
 0x7c1   :  { %v593_v20 = vadd.f32 %v591_v19, %v583_v18  ;;  %v2713_v18 = vpack.c.bf16 %v1146_v17, %v1145_v16 }
 0x7c3   :  { %2810 = vtanh.f32 %v593_v20 }
 0x7cd   :  { %v2811_v21 = vpop.eup %2810 }
 0x7ce   :  { %596 = vrot.lane.b32.xlu1 %v2811_v21, %s3137_s4 }
 0x840   :  { %v597_v22 = vpop.permute.xlu1 %596 }
 0x841   :  { %v599_v23 = vmul.f32 %v2809_v15, %v597_v22  ;;  %v1147_v22 = vld [vmem:[#allocation13 + $0x10] sm:$0xff] }
 0x843   :  { %601 = vrot.lane.b32.xlu0 %v599_v23, %s3138_s30  ;;  %v1148_v23 = vld [vmem:[#allocation13 + $0x18] sm:$0xff] }
 0x8b5   :  { %v602_v24 = vpop.permute.xlu0 %601 }
 0x8b6   :  { %605 = vst.msk [vmem:[#allocation3 + $0x10] sm:$0xff] %vm288_vm2, %v602_v24  ;;  %2511 = vmatmul.mubr.msk.f32.vlgmr.msra.gmra.mrb[4].mxu1 %vm288_vm2, %v602_v24  ;;  %v2717_v24 = vpack.c.bf16 %v1148_v23, %v1147_v22 }
 0x8b7   :  { %2697 = vmatpush3.bf16.msra.mxu1 %v3333_v6  ;;  %2532 = vmatprep.mubr.msk.f32.mxu1 %vm3135_vm0, %v3136_v2 }
 0x8b8   :  { %2698 = vmatprep.subr.bf16.mxu1 %v3134_v1 }
 0x8bb   :  { %2700 = vmatpush3.bf16.msra.mxu1 %v3338_v11 }
 0x8bc   :  { %2707 = vmatprep.subr.bf16.mxu1 %v3134_v1 }
 0x989   :  { %v676_v26 = vpop.f32.mrb[4].mxu1 }
 0x98a   :  { %v680_v27 = vadd.f32 %v676_v26, %v250_v25  ;;  %v2512_v28 = vpop.f32.mrb[5].mxu1  ;;  %v1137_v26 = vld [vmem:[#allocation3] sm:$0xff] }
 0x98b   :  { %v1139_v28 = vld [vmem:[#allocation3 + $0x10] sm:$0xff] }
 0x98c   :  { %2812 = vtanh.f32 %v680_v27  ;;  %v2319_v30 = vmul.f32 -1.442695, %v680_v27  ;;  %v1138_v27 = vld [vmem:[#allocation3 + $0x8] sm:$0xff] }
 0x98e   :  { %2814 = vpow2.f32 %v2319_v30 }
 0x996   :  { %v2813_v29 = vpop.eup %2812 }
 0x997   :  { %690 = vrot.lane.b32.xlu1 %v2813_v29, %s3137_s4 }
 0x998   :  { %v2815_v31 = vpop.eup %2814 }
 0x999   :  { %v684_v32 = vadd.f32 1.0, %v2815_v31 }
 0x99b   :  { %2816 = vrcp.f32 %v684_v32  ;;  %v265_v32 = vadd.f32 %v3358_v14, %v3393_v0 }
 0x9a5   :  { %v2817_v33 = vpop.eup %2816 }
 0x9a6   :  { %v688_v36 = vmul.f32 %v2817_v33, %v593_v20 }
 0xa09   :  { %v691_v34 = vpop.permute.xlu1 %690 }
 0xa0a   :  { %v693_v35 = vmul.f32 %v2817_v33, %v691_v34 }
 0xa0c   :  { %695 = vrot.lane.b32.xlu0 %v693_v35, %s3138_s30 }
 0xa7e   :  { %v696_v37 = vpop.permute.xlu0 %695 }
 0xa7f   :  { %v698_v38 = vadd.f32 %v696_v37, %v688_v36 }
 0xa81   :  { %2818 = vtanh.f32 %v698_v38 }
 0xa8b   :  { %v2819_v39 = vpop.eup %2818 }
 0xa8c   :  { %701 = vrot.lane.b32.xlu1 %v2819_v39, %s3137_s4 }
 0xafe   :  { %v702_v40 = vpop.permute.xlu1 %701 }
 0xaff   :  { %v704_v41 = vmul.f32 %v2817_v33, %v702_v40 }
 0xb01   :  { %706 = vrot.lane.b32.xlu0 %v704_v41, %s3138_s30 }
 0xb73   :  { %v707_v42 = vpop.permute.xlu0 %706 }
 0xb74   :  { %710 = vst.msk [vmem:[#allocation3 + $0x18] sm:$0xff] %vm288_vm2, %v707_v42  ;;  %2522 = vmatmul.mubr.msk.f32.vlgmr.msra.gmra.mrb[10].mxu0 %vm288_vm2, %v707_v42 }
 0xb75   :  { %2703 = vmatpush3.bf16.msra.mxu0 %v3333_v6  ;;  %2543 = vmatprep.mubr.msk.f32.mxu0 %vm3135_vm0, %v3136_v2 }
 0xb76   :  { %2704 = vmatprep.subr.bf16.mxu0 %v3134_v1 }
 0xb79   :  { %2706 = vmatpush3.bf16.msra.mxu0 %v3338_v11 }
 0xb7a   :  { %2714 = vmatprep.subr.bf16.mxu0 %v2713_v18 }
 0xb7b   :  { %v1140_v29 = vld [vmem:[#allocation3 + $0x18] sm:$0xff] }
 0xc47   :  { %v781_v44 = vpop.f32.mrb[10].mxu0 }
 0xc48   :  { %v785_v45 = vadd.f32 %v781_v44, %v255_v43  ;;  %v2523_v46 = vpop.f32.mrb[11].mxu0 }
 0xc4a   :  { %2820 = vtanh.f32 %v785_v45  ;;  %v2321_v48 = vmul.f32 -1.442695, %v785_v45 }
 0xc4c   :  { %2822 = vpow2.f32 %v2321_v48 }
 0xc54   :  { %v2821_v47 = vpop.eup %2820 }
 0xc55   :  { %795 = vrot.lane.b32.xlu1 %v2821_v47, %s3137_s4 }
 0xc56   :  { %v2823_v49 = vpop.eup %2822 }
 0xc57   :  { %v789_v50 = vadd.f32 1.0, %v2823_v49 }
 0xc59   :  { %2824 = vrcp.f32 %v789_v50 }
 0xc63   :  { %v2825_v51 = vpop.eup %2824 }
 0xc64   :  { %v793_v54 = vmul.f32 %v2825_v51, %v698_v38 }
 0xcc7   :  { %v796_v52 = vpop.permute.xlu1 %795 }
 0xcc8   :  { %v798_v53 = vmul.f32 %v2825_v51, %v796_v52  ;;  %v1293_v52 = vld [vmem:[#allocation14] sm:$0xff] }
 0xcca   :  { %800 = vrot.lane.b32.xlu0 %v798_v53, %s3138_s30  ;;  %v1294_v53 = vld [vmem:[#allocation14 + $0x8] sm:$0xff] }
 0xd3c   :  { %v801_v55 = vpop.permute.xlu0 %800 }
 0xd3d   :  { %v803_v56 = vadd.f32 %v801_v55, %v793_v54  ;;  %v3475_v54 = vpack.c.bf16 %v1294_v53, %v1293_v52  ;;  %v1295_v55 = vld [vmem:[#allocation14 + $0x10] sm:$0xff] }
 0xd3f   :  { %2826 = vtanh.f32 %v803_v56 }
 0xd49   :  { %v2827_v57 = vpop.eup %2826 }
 0xd4a   :  { %806 = vrot.lane.b32.xlu1 %v2827_v57, %s3137_s4 }
 0xdbc   :  { %v807_v58 = vpop.permute.xlu1 %806 }
 0xdbd   :  { %v809_v59 = vmul.f32 %v2825_v51, %v807_v58 }
 0xdbf   :  { %811 = vrot.lane.b32.xlu0 %v809_v59, %s3138_s30 }
 0xe31   :  { %v812_v60 = vpop.permute.xlu0 %811 }
 0xe32   :  { %815 = vst.msk [vmem:[#allocation3 + $0x20] sm:$0xff] %vm288_vm2, %v812_v60  ;;  %2533 = vmatmul.mubr.msk.f32.vlgmr.msra.gmra.mrb[6].mxu1 %vm288_vm2, %v812_v60  ;;  %v1300_v60 = vld [vmem:[#allocation10 + $0x8] sm:$0xff] }
 0xe33   :  { %2709 = vmatpush3.bf16.msra.mxu1 %v3333_v6  ;;  %2554 = vmatprep.mubr.msk.f32.mxu1 %vm3135_vm0, %v3136_v2 }
 0xe34   :  { %2710 = vmatprep.subr.bf16.mxu1 %v3134_v1 }
 0xe37   :  { %2712 = vmatpush3.bf16.msra.mxu1 %v3338_v11 }
 0xe38   :  { %2721 = vmatprep.subr.bf16.mxu1 %v3134_v1 }
 0xe39   :  { %v1141_v30 = vld [vmem:[#allocation3 + $0x20] sm:$0xff] }
 0xf05   :  { %v886_v3 = vpop.f32.mrb[6].mxu1 }
 0xf06   :  { %v890_v4 = vadd.f32 %v886_v3, %v260_v62  ;;  %v2534_v5 = vpop.f32.mrb[7].mxu1  ;;  %v1298_v3 = vld [vmem:[#allocation8 + $0x8] sm:$0xff] }
 0xf07   :  { %v270_v5 = vadd.f32 %v3391_v63, %v3358_v14 }
 0xf08   :  { %2828 = vtanh.f32 %v890_v4  ;;  %v2323_v6 = vmul.f32 -1.442695, %v890_v4 }
 0xf0a   :  { %2830 = vpow2.f32 %v2323_v6 }
 0xf12   :  { %v2829_v7 = vpop.eup %2828 }
 0xf13   :  { %900 = vrot.lane.b32.xlu1 %v2829_v7, %s3137_s4 }
 0xf14   :  { %v2831_v8 = vpop.eup %2830 }
 0xf15   :  { %v894_v9 = vadd.f32 1.0, %v2831_v8 }
 0xf17   :  { %2832 = vrcp.f32 %v894_v9  ;;  %v3506_v9 = vld [vmem:[%s3688_s8] ss:$0 sm:$0xff] }
 0xf21   :  { %v2833_v10 = vpop.eup %2832 }
 0xf22   :  { %v898_v13 = vmul.f32 %v2833_v10, %v803_v56  ;;  %v1296_v56 = vld [vmem:[#allocation14 + $0x18] sm:$0xff] }
 0xf23   :  { %v3479_v57 = vpack.c.bf16 %v1296_v56, %v1295_v55 }
 0xf85   :  { %v901_v12 = vpop.permute.xlu1 %900 }
 0xf86   :  { %v903_v11 = vmul.f32 %v2833_v10, %v901_v12 }
 0xf88   :  { %905 = vrot.lane.b32.xlu0 %v903_v11, %s3138_s30 }
 0xffa   :  { %v906_v15 = vpop.permute.xlu0 %905 }
 0xffb   :  { %v908_v61 = vadd.f32 %v906_v15, %v898_v13 }
 0xffd   :  { %2834 = vtanh.f32 %v908_v61 }
0x1007   :  { %v2835_v19 = vpop.eup %2834 }
0x1008   :  { %911 = vrot.lane.b32.xlu1 %v2835_v19, %s3137_s4 }
0x107a   :  { %v912_v20 = vpop.permute.xlu1 %911 }
0x107b   :  { %v914_v21 = vmul.f32 %v2833_v10, %v912_v20 }
0x107d   :  { %916 = vrot.lane.b32.xlu0 %v914_v21, %s3138_s30 }
0x10ef   :  { %v917_v25 = vpop.permute.xlu0 %916 }
0x10f0   :  { %920 = vst.msk [vmem:[#allocation3 + $0x28] sm:$0xff] %vm288_vm2, %v917_v25  ;;  %2544 = vmatmul.mubr.msk.f32.vlgmr.msra.gmra.mrb[12].mxu0 %vm288_vm2, %v917_v25 }
0x10f1   :  { %2716 = vmatpush3.bf16.msra.mxu0 %v2713_v18  ;;  %2565 = vmatprep.mubr.msk.f32.mxu0 %vm288_vm2, %v1137_v26 }
0x10f2   :  { %2718 = vmatprep.subr.bf16.mxu0 %v2717_v24 }
0x10f5   :  { %2720 = vmatpush3.bf16.msra.mxu0 %v2717_v24 }
0x10f6   :  { %2733 = vmatprep.subr.bf16.mxu0 %v3134_v1 }
0x10f7   :  { %v1142_v31 = vld [vmem:[#allocation3 + $0x28] sm:$0xff] }
0x10f8   :  { %2566 = vmatmul.mubr.msk.f32.vlgmr.msra.gmra.mrb[14].mxu0 %vm288_vm2, %v1138_v27 }
0x10f9   :  { %2568 = vmatprep.mubr.msk.f32.mxu0 %vm288_vm2, %v1139_v28  ;;  %2735 = vmatpush3.bf16.msra.mxu0 %v3475_v54 }
0x10fa   :  { %2736 = vmatprep.subr.bf16.mxu0 %v3134_v1 }
0x10fc   :  { %2569 = vmatmul.mubr.msk.f32.gmra.mrb[16].mxu0 %vm288_vm2, %v1140_v29 }
0x10fd   :  { %2571 = vmatprep.mubr.msk.f32.mxu0 %vm288_vm2, %v1141_v30  ;;  %2738 = vmatpush3.bf16.msra.mxu0 %v3479_v57 }
0x10fe   :  { %2745 = vmatprep.subr.bf16.mxu0 %v3134_v1 }
0x1100   :  { %2572 = vmatmul.mubr.msk.f32.gmra.mrb[18].mxu0 %vm288_vm2, %v1142_v31 }
0x11c3   :  { %v991_v33 = vpop.f32.mrb[12].mxu0 }
0x11c4   :  { %v995_v34 = vadd.f32 %v991_v33, %v265_v32  ;;  %v2545_v35 = vpop.f32.mrb[13].mxu0 }
0x11c6   :  { %2836 = vtanh.f32 %v995_v34  ;;  %v2325_v43 = vmul.f32 -1.442695, %v995_v34 }
0x11c8   :  { %2838 = vpow2.f32 %v2325_v43 }
0x11cb   :  { %v3459_v36 = vpop.f32.mrb[14].mxu0 }
0x11cc   :  { %v1246_v37 = vpop.f32.mrb[15].mxu0 }
0x11cd   :  { %v1247_v10 = vadd.f32 %v3506_v9, %v1246_v37 }
0x11cf   :  { %v3461_v38 = vpop.f32.mrb[16].mxu0 }
0x11d0   :  { %v2837_v39 = vpop.eup %2836  ;;  %v3463_v40 = vpop.f32.mrb[17].mxu0 }
0x11d1   :  { %1005 = vrot.lane.b32.xlu1 %v2837_v39, %s3137_s4 }
0x11d2   :  { %v2839_v0 = vpop.eup %2838 }
0x11d3   :  { %v3466_v41 = vpop.f32.mrb[18].mxu0  ;;  %v999_v44 = vadd.f32 1.0, %v2839_v0 }
0x11d4   :  { %v3468_v42 = vpop.f32.mrb[19].mxu0 }
0x11d5   :  { %2840 = vrcp.f32 %v999_v44  ;;  %v1252_v44 = vadd.f32 %v3459_v36, %v3506_v9 }
0x11df   :  { %v2841_v45 = vpop.eup %2840 }
0x11e0   :  { %v1003_v48 = vmul.f32 %v2841_v45, %v908_v61 }
0x1243   :  { %v1006_v46 = vpop.permute.xlu1 %1005 }
0x1244   :  { %v1008_v47 = vmul.f32 %v2841_v45, %v1006_v46 }
0x1246   :  { %1010 = vrot.lane.b32.xlu0 %v1008_v47, %s3138_s30 }
0x12b8   :  { %v1011_v49 = vpop.permute.xlu0 %1010 }
0x12b9   :  { %v3471_v50 = vadd.f32 %v1011_v49, %v1003_v48 }
0x12bb   :  { %2842 = vtanh.f32 %v3471_v50 }
0x12c5   :  { %v2843_v51 = vpop.eup %2842 }
0x12c6   :  { %1016 = vrot.lane.b32.xlu1 %v2843_v51, %s3137_s4 }
0x1338   :  { %v1017_v58 = vpop.permute.xlu1 %1016 }
0x1339   :  { %v1019_v59 = vmul.f32 %v2841_v45, %v1017_v58 }
0x133b   :  { %1021 = vrot.lane.b32.xlu0 %v1019_v59, %s3138_s30 }
0x133f   :  { %1384 = vrot.lane.b32.xlu0 %v1300_v60, %s3138_s30 }
0x13ad   :  { %v1022_v62 = vpop.permute.xlu0 %1021 }
0x13ae   :  { %1025 = vst.msk [vmem:[#allocation3 + $0x30] sm:$0xff] %vm288_vm2, %v1022_v62  ;;  %2555 = vmatmul.mubr.msk.f32.vlgmr.msra.gmra.mrb[8].mxu1 %vm288_vm2, %v1022_v62 }
0x13af   :  { %2723 = vmatpush3.bf16.msra.mxu1 %v3475_v54  ;;  %2585 = vmatprep.mubr.msk.f32.mxu1 %vm3135_vm0, %v3136_v2 }
0x13b0   :  { %2724 = vmatprep.subr.bf16.mxu1 %v3134_v1 }
0x13b1   :  { %v1385_v19 = vpop.permute.xlu0 %1384 }
0x13b3   :  { %2726 = vmatpush3.bf16.msra.mxu1 %v3479_v57 }
0x13b4   :  { %2727 = vmatprep.subr.bf16.mxu1 %v3134_v1 }
0x13b5   :  { %v1143_v4 = vld [vmem:[#allocation3 + $0x30] sm:$0xff] }
0x13b6   :  { %2586 = vmatmul.mubr.msk.f32.vlgmr.msra.gmra.mrb[10].mxu1 %vm288_vm2, %v1298_v3  ;;  %2574 = vmatprep.mubr.msk.f32.mxu0 %vm288_vm2, %v1143_v4 }
0x13b7   :  { %2729 = vmatpush3.bf16.msra.mxu1 %v3475_v54  ;;  %2596 = vmatprep.mubr.msk.f32.mxu1 %vm3135_vm0, %v3136_v2 }
0x13b8   :  { %2730 = vmatprep.subr.bf16.mxu1 %v3134_v1 }
0x13bb   :  { %2732 = vmatpush3.bf16.msra.mxu1 %v3479_v57 }
0x13bc   :  { %2739 = vmatprep.subr.bf16.mxu1 %v3134_v1 }
0x1481   :  { %v1096_v7 = vpop.f32.mrb[8].mxu1 }
0x1482   :  { %v1100_v6 = vadd.f32 %v1096_v7, %v270_v5  ;;  %v2556_v8 = vpop.f32.mrb[9].mxu1 }
0x1483   :  { %v1257_v8 = vadd.f32 %v3506_v9, %v3463_v40 }
0x1484   :  { %v2327_v25 = vmul.f32 -1.442695, %v1100_v6 }
0x1489   :  { %v1371_v12 = vpop.f32.mrb[10].mxu1 }
0x148a   :  { %v1375_v11 = vadd.f32 %v1371_v12, %v1247_v10  ;;  %v2587_v13 = vpop.f32.mrb[11].mxu1 }
0x148c   :  { %2844 = vtanh.f32 %v1375_v11  ;;  %v2338_v61 = vmul.f32 -1.442695, %v1375_v11 }
0x148e   :  { %2846 = vpow2.f32 %v2338_v61 }
0x1496   :  { %v2845_v15 = vpop.eup %2844 }
0x1497   :  { %1389 = vrot.lane.b32.xlu1 %v2845_v15, %s3137_s4 }
0x1498   :  { %v2847_v14 = vpop.eup %2846 }
0x1499   :  { %v1379_v63 = vadd.f32 1.0, %v2847_v14 }
0x149b   :  { %2848 = vrcp.f32 %v1379_v63 }
0x14a5   :  { %v2849_v16 = vpop.eup %2848 }
0x14a6   :  { %v1387_v20 = vmul.f32 %v2849_v16, %v1385_v19 }
0x1509   :  { %v1390_v17 = vpop.permute.xlu1 %1389 }
0x150a   :  { %v1392_v18 = vmul.f32 %v2849_v16, %v1390_v17 }
0x150c   :  { %1394 = vrot.lane.b32.xlu1 %v1392_v18, %s3138_s30 }
0x157e   :  { %v1395_v21 = vpop.permute.xlu1 %1394 }
0x157f   :  { %v1397_v22 = vadd.f32 %v1395_v21, %v1387_v20 }
0x1581   :  { %2850 = vtanh.f32 %v1397_v22 }
0x1582   :  { %2852 = vtanh.f32 %v1100_v6 }
0x1583   :  { %2854 = vpow2.f32 %v2327_v25 }
0x158b   :  { %v2851_v23 = vpop.eup %2850 }
0x158c   :  { %1400 = vrot.lane.b32.xlu0 %v2851_v23, %s3137_s4  ;;  %v2853_v24 = vpop.eup %2852 }
0x158d   :  { %v2855_v26 = vpop.eup %2854 }
0x158e   :  { %v1104_v27 = vadd.f32 1.0, %v2855_v26 }
0x1590   :  { %1110 = vrot.lane.b32.xlu0 %v2853_v24, %s3137_s4  ;;  %2856 = vrcp.f32 %v1104_v27  ;;  %v1262_v24 = vadd.f32 %v3461_v38, %v3506_v9 }
0x159a   :  { %v2857_v30 = vpop.eup %2856 }
0x159b   :  { %v1108_v34 = vmul.f32 %v2857_v30, %v3471_v50 }
0x15fe   :  { %v1401_v28 = vpop.permute.xlu0 %1400 }
0x15ff   :  { %v1403_v29 = vmul.f32 %v2849_v16, %v1401_v28 }
0x1601   :  { %1405 = vrot.lane.b32.xlu1 %v1403_v29, %s3138_s30 }
0x1602   :  { %v1111_v31 = vpop.permute.xlu0 %1110 }
0x1603   :  { %v1113_v32 = vmul.f32 %v2857_v30, %v1111_v31 }
0x1605   :  { %1115 = vrot.lane.b32.xlu0 %v1113_v32, %s3138_s30 }
0x1673   :  { %v1406_v33 = vpop.permute.xlu1 %1405 }
0x1674   :  { %1408 = vst.msk [vmem:[#allocation3] sm:$0xff] %vm288_vm2, %v1406_v33  ;;  %2597 = vmatmul.mubr.msk.f32.vlgmr.msra.gmra.mrb[12].mxu1 %vm288_vm2, %v1406_v33 }
0x1675   :  { %2741 = vmatpush3.bf16.msra.mxu1 %v3475_v54  ;;  %2618 = vmatprep.mubr.msk.f32.mxu1 %vm3135_vm0, %v3136_v2 }
0x1676   :  { %2742 = vmatprep.subr.bf16.mxu1 %v3134_v1 }
0x1677   :  { %v1116_v35 = vpop.permute.xlu0 %1115 }
0x1678   :  { %v3522_v37 = vadd.f32 %v1116_v35, %v1108_v34 }
0x1679   :  { %2744 = vmatpush3.bf16.msra.mxu1 %v3479_v57 }
0x167a   :  { %2858 = vtanh.f32 %v3522_v37  ;;  %2751 = vmatprep.subr.bf16.mxu1 %v3134_v1 }
0x1684   :  { %v2859_v39 = vpop.eup %2858 }
0x1685   :  { %1121 = vrot.lane.b32.xlu0 %v2859_v39, %s3137_s4 }
0x16f7   :  { %v1122_v43 = vpop.permute.xlu0 %1121 }
0x16f8   :  { %v1124_v0 = vmul.f32 %v2857_v30, %v1122_v43 }
0x16fa   :  { %1126 = vrot.lane.b32.xlu0 %v1124_v0, %s3138_s30 }
0x1747   :  { %v1478_v45 = vpop.f32.mrb[12].mxu1 }
0x1748   :  { %v1482_v46 = vadd.f32 %v1478_v45, %v1252_v44  ;;  %v2598_v47 = vpop.f32.mrb[13].mxu1 }
0x174a   :  { %2860 = vtanh.f32 %v1482_v46  ;;  %v2340_v51 = vmul.f32 -1.442695, %v1482_v46  ;;  %v1267_v46 = vadd.f32 %v3506_v9, %v3468_v42 }
0x174c   :  { %2862 = vpow2.f32 %v2340_v51 }
0x1754   :  { %v2861_v48 = vpop.eup %2860 }
0x1755   :  { %1492 = vrot.lane.b32.xlu1 %v2861_v48, %s3137_s4 }
0x1756   :  { %v2863_v36 = vpop.eup %2862 }
0x1757   :  { %v1486_v52 = vadd.f32 1.0, %v2863_v36 }
0x1759   :  { %2864 = vrcp.f32 %v1486_v52 }
0x1763   :  { %v2865_v53 = vpop.eup %2864 }
0x1764   :  { %v1490_v58 = vmul.f32 %v2865_v53, %v1397_v22 }
0x176c   :  { %v1127_v49 = vpop.permute.xlu0 %1126 }
0x176d   :  { %1130 = vst.msk [vmem:[#allocation3 + $0x38] sm:$0xff] %vm288_vm2, %v1127_v49  ;;  %1131 = vst.msk [vmem:[#allocation17] sm:$0xff] %vm288_vm2, %v1127_v49 }
0x1774   :  { %v1144_v50 = vld [vmem:[#allocation3 + $0x38] sm:$0xff] }
0x1775   :  { %2575 = vmatmul.mubr.msk.f32.gmra.mrb[20].mxu0 %vm288_vm2, %v1144_v50 }
0x1776   :  { %2607 = vmatprep.mubr.msk.f32.mxu0 %vm3135_vm0, %v3136_v2 }
0x17c7   :  { %v1493_v55 = vpop.permute.xlu1 %1492 }
0x17c8   :  { %v1495_v56 = vmul.f32 %v2865_v53, %v1493_v55 }
0x17ca   :  { %1497 = vrot.lane.b32.xlu1 %v1495_v56, %s3138_s30 }
0x183c   :  { %v1498_v59 = vpop.permute.xlu1 %1497 }
0x183d   :  { %v1500_v60 = vadd.f32 %v1498_v59, %v1490_v58 }
0x183f   :  { %2866 = vtanh.f32 %v1500_v60 }
0x1848   :  { %v3538_v62 = vpop.f32.mrb[20].mxu0 }
0x1849   :  { %v2867_v3 = vpop.eup %2866  ;;  %v3540_v4 = vpop.f32.mrb[21].mxu0 }
0x184a   :  { %1503 = vrot.lane.b32.xlu1 %v2867_v3, %s3137_s4 }
0x18bc   :  { %v1504_v5 = vpop.permute.xlu1 %1503 }
0x18bd   :  { %v1506_v7 = vmul.f32 %v2865_v53, %v1504_v5 }
0x18bf   :  { %1508 = vrot.lane.b32.xlu1 %v1506_v7, %s3138_s30 }
0x1931   :  { %v1509_v6 = vpop.permute.xlu1 %1508 }
0x1932   :  { %1511 = vst.msk [vmem:[#allocation3 + $0x8] sm:$0xff] %vm288_vm2, %v1509_v6  ;;  %2608 = vmatmul.mubr.msk.f32.vlgmr.msra.gmra.mrb[22].mxu0 %vm288_vm2, %v1509_v6  ;;  %v1272_v6 = vadd.f32 %v3466_v41, %v3506_v9 }
0x1933   :  { %2747 = vmatpush3.bf16.msra.mxu0 %v3475_v54  ;;  %2629 = vmatprep.mubr.msk.f32.mxu0 %vm3135_vm0, %v3136_v2 }
0x1934   :  { %2748 = vmatprep.subr.bf16.mxu0 %v3134_v1 }
0x1937   :  { %2750 = vmatpush3.bf16.msra.mxu0 %v3479_v57 }
0x1938   :  { %2757 = vmatprep.subr.bf16.mxu0 %v3134_v1 }
0x1a05   :  { %v1581_v10 = vpop.f32.mrb[22].mxu0 }
0x1a06   :  { %v1585_v12 = vadd.f32 %v1581_v10, %v1257_v8  ;;  %v2609_v11 = vpop.f32.mrb[23].mxu0 }
0x1a08   :  { %2868 = vtanh.f32 %v1585_v12  ;;  %v2342_v15 = vmul.f32 -1.442695, %v1585_v12 }
0x1a0a   :  { %2870 = vpow2.f32 %v2342_v15 }
0x1a12   :  { %v2869_v13 = vpop.eup %2868 }
0x1a13   :  { %1595 = vrot.lane.b32.xlu0 %v2869_v13, %s3137_s4 }
0x1a14   :  { %v2871_v61 = vpop.eup %2870 }
0x1a15   :  { %v1589_v14 = vadd.f32 1.0, %v2871_v61 }
0x1a17   :  { %2872 = vrcp.f32 %v1589_v14 }
0x1a21   :  { %v2873_v63 = vpop.eup %2872 }
0x1a22   :  { %v1593_v18 = vmul.f32 %v2873_v63, %v1500_v60 }
0x1a85   :  { %v1596_v16 = vpop.permute.xlu0 %1595 }
0x1a86   :  { %v1598_v17 = vmul.f32 %v2873_v63, %v1596_v16 }
0x1a88   :  { %1600 = vrot.lane.b32.xlu1 %v1598_v17, %s3138_s30 }
0x1afa   :  { %v1601_v19 = vpop.permute.xlu1 %1600 }
0x1afb   :  { %v1603_v40 = vadd.f32 %v1601_v19, %v1593_v18  ;;  %v1277_v19 = vadd.f32 %v3506_v9, %v3540_v4 }
0x1afd   :  { %2874 = vtanh.f32 %v1603_v40 }
0x1b07   :  { %v2875_v20 = vpop.eup %2874 }
0x1b08   :  { %1606 = vrot.lane.b32.xlu0 %v2875_v20, %s3137_s4 }
0x1b7a   :  { %v1607_v21 = vpop.permute.xlu0 %1606 }
0x1b7b   :  { %v1609_v22 = vmul.f32 %v2873_v63, %v1607_v21 }
0x1b7d   :  { %1611 = vrot.lane.b32.xlu1 %v1609_v22, %s3138_s30 }
0x1bef   :  { %v1612_v23 = vpop.permute.xlu1 %1611 }
0x1bf0   :  { %1614 = vst.msk [vmem:[#allocation3 + $0x10] sm:$0xff] %vm288_vm2, %v1612_v23  ;;  %2619 = vmatmul.mubr.msk.f32.vlgmr.msra.gmra.mrb[14].mxu1 %vm288_vm2, %v1612_v23 }
0x1bf1   :  { %2753 = vmatpush3.bf16.msra.mxu1 %v3475_v54  ;;  %2640 = vmatprep.mubr.msk.f32.mxu1 %vm3135_vm0, %v3136_v2 }
0x1bf2   :  { %2754 = vmatprep.subr.bf16.mxu1 %v3134_v1 }
0x1bf5   :  { %2756 = vmatpush3.bf16.msra.mxu1 %v3479_v57 }
0x1bf6   :  { %2763 = vmatprep.subr.bf16.mxu1 %v3134_v1 }
0x1cc3   :  { %v1684_v25 = vpop.f32.mrb[14].mxu1 }
0x1cc4   :  { %v1688_v26 = vadd.f32 %v1684_v25, %v1262_v24  ;;  %v2620_v27 = vpop.f32.mrb[15].mxu1 }
0x1cc6   :  { %2876 = vtanh.f32 %v1688_v26  ;;  %v2344_v29 = vmul.f32 -1.442695, %v1688_v26 }
0x1cc8   :  { %2878 = vpow2.f32 %v2344_v29 }
0x1cd0   :  { %v2877_v28 = vpop.eup %2876 }
0x1cd1   :  { %1698 = vrot.lane.b32.xlu0 %v2877_v28, %s3137_s4 }
0x1cd2   :  { %v2879_v30 = vpop.eup %2878 }
0x1cd3   :  { %v1692_v31 = vadd.f32 1.0, %v2879_v30 }
0x1cd5   :  { %2880 = vrcp.f32 %v1692_v31 }
0x1cdf   :  { %v2881_v32 = vpop.eup %2880 }
0x1ce0   :  { %v1696_v35 = vmul.f32 %v2881_v32, %v1603_v40 }
0x1d43   :  { %v1699_v33 = vpop.permute.xlu0 %1698 }
0x1d44   :  { %v1701_v34 = vmul.f32 %v2881_v32, %v1699_v33 }
0x1d46   :  { %1703 = vrot.lane.b32.xlu1 %v1701_v34, %s3138_s30 }
0x1db8   :  { %v1704_v39 = vpop.permute.xlu1 %1703 }
0x1db9   :  { %v1706_v38 = vadd.f32 %v1704_v39, %v1696_v35  ;;  %v1282_v35 = vadd.f32 %v3538_v62, %v3506_v9  ;;  %v2185_v62 = vld [vmem:[#allocation4] sm:$0x1] }
0x1dba   :  { %2769 = vpush %v2185_v62 }
0x1dbb   :  { %2882 = vtanh.f32 %v1706_v38 }
0x1dc5   :  { %v2883_v43 = vpop.eup %2882 }
0x1dc6   :  { %1709 = vrot.lane.b32.xlu0 %v2883_v43, %s3137_s4 }
0x1e38   :  { %v1710_v0 = vpop.permute.xlu0 %1709 }
0x1e39   :  { %v1712_v44 = vmul.f32 %v2881_v32, %v1710_v0 }
0x1e3b   :  { %1714 = vrot.lane.b32.xlu1 %v1712_v44, %s3138_s30 }
0x1ead   :  { %v1715_v45 = vpop.permute.xlu1 %1714 }
0x1eae   :  { %1717 = vst.msk [vmem:[#allocation3 + $0x18] sm:$0xff] %vm288_vm2, %v1715_v45  ;;  %2630 = vmatmul.mubr.msk.f32.vlgmr.msra.gmra.mrb[24].mxu0 %vm288_vm2, %v1715_v45 }
0x1eaf   :  { %2759 = vmatpush3.bf16.msra.mxu0 %v3475_v54  ;;  %2651 = vmatprep.mubr.msk.f32.mxu0 %vm3135_vm0, %v3136_v2 }
0x1eb0   :  { %2760 = vmatprep.subr.bf16.mxu0 %v3134_v1 }
0x1eb3   :  { %2762 = vmatpush3.bf16.msra.mxu0 %v3479_v57 }
0x1f81   :  { %v1787_v47 = vpop.f32.mrb[24].mxu0 }
0x1f82   :  { %v1791_v48 = vadd.f32 %v1787_v47, %v1267_v46  ;;  %v2631_v49 = vpop.f32.mrb[25].mxu0 }
0x1f84   :  { %2884 = vtanh.f32 %v1791_v48  ;;  %v2346_v51 = vmul.f32 -1.442695, %v1791_v48 }
0x1f86   :  { %2886 = vpow2.f32 %v2346_v51 }
0x1f8e   :  { %v2885_v50 = vpop.eup %2884 }
0x1f8f   :  { %1801 = vrot.lane.b32.xlu0 %v2885_v50, %s3137_s4 }
0x1f90   :  { %v2887_v36 = vpop.eup %2886 }
0x1f91   :  { %v1795_v52 = vadd.f32 1.0, %v2887_v36 }
0x1f93   :  { %2888 = vrcp.f32 %v1795_v52  ;;  %v2138_v52 = vld [vmem:[#allocation3] sm:$0xff] }
0x1f9d   :  { %v2889_v53 = vpop.eup %2888 }
0x1f9e   :  { %v1799_v58 = vmul.f32 %v2889_v53, %v1706_v38 }
0x2001   :  { %v1802_v55 = vpop.permute.xlu0 %1801 }
0x2002   :  { %v1804_v56 = vmul.f32 %v2889_v53, %v1802_v55 }
0x2004   :  { %1806 = vrot.lane.b32.xlu1 %v1804_v56, %s3138_s30  ;;  %v2140_v56 = vld [vmem:[#allocation3 + $0x10] sm:$0xff] }
0x2076   :  { %v1807_v59 = vpop.permute.xlu1 %1806 }
0x2077   :  { %v1809_v42 = vadd.f32 %v1807_v59, %v1799_v58 }
0x2079   :  { %2890 = vtanh.f32 %v1809_v42 }
0x2083   :  { %v2891_v60 = vpop.eup %2890 }
0x2084   :  { %1812 = vrot.lane.b32.xlu0 %v2891_v60, %s3137_s4 }
0x20f6   :  { %v1813_v3 = vpop.permute.xlu0 %1812 }
0x20f7   :  { %v1815_v5 = vmul.f32 %v2889_v53, %v1813_v3  ;;  %v2353_v53 = vld [vmem:[%s3689_s9] ss:$0 sm:$0xff]  ;;  %s3139_s9 = smov 96  }
0x20f8   :  { %v2153_v55 = vmul.f32 %v2353_v53, %v2138_v52  ;;  %v2155_v59 = vmul.f32 %v2353_v53, %v2140_v56 }
0x20f9   :  { %1817 = vrot.lane.b32.xlu1 %v1815_v5, %s3138_s30 }
0x20fa   :  { %v2161_v58 = vsel %vm288_vm2, %v2153_v55, 0.0  ;;  %v2167_v60 = vsel %vm288_vm2, %v2155_v59, 0.0 }
0x216b   :  { %v1818_v7 = vpop.permute.xlu1 %1817 }
0x216c   :  { %1820 = vst.msk [vmem:[#allocation3 + $0x20] sm:$0xff] %vm288_vm2, %v1818_v7  ;;  %2641 = vmatmul.mubr.msk.f32.vlgmr.msra.gmra.mrb[16].mxu1 %vm288_vm2, %v1818_v7 }
0x216d   :  { %2765 = vmatpush3.bf16.msra.mxu1 %v3475_v54  ;;  %2662 = vmatprep.mubr.msk.f32.mxu1 %vm3135_vm0, %v3136_v2 }
0x216e   :  { %2766 = vmatprep.subr.bf16.mxu1 %v3134_v1 }
0x2171   :  { %2768 = vmatpush3.bf16.msra.mxu1 %v3479_v57 }
0x223f   :  { %v1890_v8 = vpop.f32.mrb[16].mxu1 }
0x2240   :  { %v1894_v10 = vadd.f32 %v1890_v8, %v1272_v6  ;;  %v2642_v12 = vpop.f32.mrb[17].mxu1 }
0x2242   :  { %2892 = vtanh.f32 %v1894_v10  ;;  %v2348_v13 = vmul.f32 -1.442695, %v1894_v10 }
0x2244   :  { %2894 = vpow2.f32 %v2348_v13 }
0x224c   :  { %v2893_v11 = vpop.eup %2892 }
0x224d   :  { %1904 = vrot.lane.b32.xlu0 %v2893_v11, %s3137_s4  ;;  %v2139_v11 = vld [vmem:[#allocation3 + $0x8] sm:$0xff] }
0x224e   :  { %v2895_v54 = vpop.eup %2894  ;;  %v2154_v13 = vmul.f32 %v2353_v53, %v2139_v11 }
0x224f   :  { %v1898_v15 = vadd.f32 1.0, %v2895_v54  ;;  %v2142_v54 = vld [vmem:[#allocation3 + $0x20] sm:$0xff] }
0x2251   :  { %2896 = vrcp.f32 %v1898_v15  ;;  %v2164_v15 = vsel %vm288_vm2, %v2154_v13, 0.0 }
0x225b   :  { %v2897_v2 = vpop.eup %2896 }
0x225c   :  { %v1902_v57 = vmul.f32 %v2897_v2, %v1809_v42  ;;  %v2141_v42 = vld [vmem:[#allocation3 + $0x18] sm:$0xff] }
0x225d   :  { %v2156_v3 = vmul.f32 %v2353_v53, %v2141_v42 }
0x225f   :  { %v2170_v7 = vsel %vm288_vm2, %v2156_v3, 0.0 }
0x22bf   :  { %v1905_v61 = vpop.permute.xlu0 %1904 }
0x22c0   :  { %v1907_v1 = vmul.f32 %v2897_v2, %v1905_v61 }
0x22c2   :  { %1909 = vrot.lane.b32.xlu1 %v1907_v1, %s3138_s30 }
0x2334   :  { %v1910_v14 = vpop.permute.xlu1 %1909 }
0x2335   :  { %v1912_v41 = vadd.f32 %v1910_v14, %v1902_v57 }
0x2337   :  { %2898 = vtanh.f32 %v1912_v41 }
0x2341   :  { %v2899_v63 = vpop.eup %2898 }
0x2342   :  { %1915 = vrot.lane.b32.xlu0 %v2899_v63, %s3137_s4 }
0x23b4   :  { %v1916_v16 = vpop.permute.xlu0 %1915 }
0x23b5   :  { %v1918_v17 = vmul.f32 %v2897_v2, %v1916_v16  ;;  %v2157_v2 = vmul.f32 %v2353_v53, %v2142_v54 }
0x23b7   :  { %1920 = vrot.lane.b32.xlu1 %v1918_v17, %s3138_s30  ;;  %v2173_v1 = vsel %vm288_vm2, %v2157_v2, 0.0 }
0x2429   :  { %v1921_v18 = vpop.permute.xlu1 %1920 }
0x242a   :  { %1923 = vst.msk [vmem:[#allocation3 + $0x28] sm:$0xff] %vm288_vm2, %v1921_v18  ;;  %2652 = vmatmul.mubr.msk.f32.vlgmr.msra.gmra.mrb[26].mxu0 %vm288_vm2, %v1921_v18 }
0x2431   :  { %v2143_v5 = vld [vmem:[#allocation3 + $0x28] sm:$0xff] }
0x2432   :  { %v2158_v6 = vmul.f32 %v2353_v53, %v2143_v5 }
0x2434   :  { %v2176_v8 = vsel %vm288_vm2, %v2158_v6, 0.0 }
0x24fd   :  { %v1993_v40 = vpop.f32.mrb[26].mxu0 }
0x24fe   :  { %v1997_v20 = vadd.f32 %v1993_v40, %v1277_v19  ;;  %v2653_v21 = vpop.f32.mrb[27].mxu0 }
0x2500   :  { %2900 = vtanh.f32 %v1997_v20  ;;  %v2350_v23 = vmul.f32 -1.442695, %v1997_v20 }
0x2502   :  { %2902 = vpow2.f32 %v2350_v23 }
0x250a   :  { %v2901_v22 = vpop.eup %2900 }
0x250b   :  { %2007 = vrot.lane.b32.xlu0 %v2901_v22, %s3137_s4 }
0x250c   :  { %v2903_v24 = vpop.eup %2902 }
0x250d   :  { %v2001_v25 = vadd.f32 1.0, %v2903_v24 }
0x250f   :  { %2904 = vrcp.f32 %v2001_v25 }
0x2519   :  { %v2905_v26 = vpop.eup %2904 }
0x251a   :  { %v2005_v29 = vmul.f32 %v2905_v26, %v1912_v41 }
0x257d   :  { %v2008_v27 = vpop.permute.xlu0 %2007 }
0x257e   :  { %v2010_v28 = vmul.f32 %v2905_v26, %v2008_v27 }
0x2580   :  { %2012 = vrot.lane.b32.xlu1 %v2010_v28, %s3138_s30 }
0x25f2   :  { %v2013_v30 = vpop.permute.xlu1 %2012 }
0x25f3   :  { %v2015_v4 = vadd.f32 %v2013_v30, %v2005_v29 }
0x25f5   :  { %2906 = vtanh.f32 %v2015_v4 }
0x25ff   :  { %v2907_v31 = vpop.eup %2906 }
0x2600   :  { %2018 = vrot.lane.b32.xlu0 %v2907_v31, %s3137_s4 }
0x2672   :  { %v2019_v32 = vpop.permute.xlu0 %2018 }
0x2673   :  { %v2021_v33 = vmul.f32 %v2905_v26, %v2019_v32 }
0x2675   :  { %2023 = vrot.lane.b32.xlu1 %v2021_v33, %s3138_s30 }
0x26e7   :  { %v2024_v34 = vpop.permute.xlu1 %2023 }
0x26e8   :  { %2026 = vst.msk [vmem:[#allocation3 + $0x30] sm:$0xff] %vm288_vm2, %v2024_v34  ;;  %2663 = vmatmul.mubr.msk.f32.vlgmr.msra.gmra.mrb[18].mxu1 %vm288_vm2, %v2024_v34 }
0x26ef   :  { %v2144_v61 = vld [vmem:[#allocation3 + $0x30] sm:$0xff] }
0x26f0   :  { %v2159_v57 = vmul.f32 %v2353_v53, %v2144_v61 }
0x26f2   :  { %v2179_v14 = vsel %vm288_vm2, %v2159_v57, 0.0 }
0x27bb   :  { %v2096_v39 = vpop.f32.mrb[18].mxu1 }
0x27bc   :  { %v2100_v38 = vadd.f32 %v2096_v39, %v1282_v35  ;;  %v2664_v43 = vpop.f32.mrb[19].mxu1 }
0x27be   :  { %2908 = vtanh.f32 %v2100_v38  ;;  %v2352_v44 = vmul.f32 -1.442695, %v2100_v38 }
0x27c0   :  { %2910 = vpow2.f32 %v2352_v44 }
0x27c8   :  { %v2909_v0 = vpop.eup %2908 }
0x27c9   :  { %2110 = vrot.lane.b32.xlu0 %v2909_v0, %s3137_s4 }
0x27ca   :  { %v2911_v45 = vpop.eup %2910 }
0x27cb   :  { %v2104_v46 = vadd.f32 1.0, %v2911_v45 }
0x27cd   :  { %2912 = vrcp.f32 %v2104_v46 }
0x27d7   :  { %v2913_v47 = vpop.eup %2912 }
0x27d8   :  { %v2108_v50 = vmul.f32 %v2913_v47, %v2015_v4 }
0x283b   :  { %v2111_v48 = vpop.permute.xlu0 %2110 }
0x283c   :  { %v2113_v49 = vmul.f32 %v2913_v47, %v2111_v48 }
0x283e   :  { %2115 = vrot.lane.b32.xlu1 %v2113_v49, %s3138_s30 }
0x28b0   :  { %v2116_v51 = vpop.permute.xlu1 %2115 }
0x28b1   :  { %v2118_v9 = vadd.f32 %v2116_v51, %v2108_v50 }
0x28b3   :  { %2914 = vtanh.f32 %v2118_v9 }
0x28bd   :  { %v2915_v36 = vpop.eup %2914 }
0x28be   :  { %2121 = vrot.lane.b32.xlu0 %v2915_v36, %s3137_s4 }
0x28dd   :  { %2162 = vadd.xlane.f32.xlu0 %v2161_v58 }
0x28e1   :  { %2168 = vadd.xlane.f32.xlu0 %v2167_v60 }
0x28e5   :  { %2171 = vadd.xlane.f32.xlu0 %v2170_v7 }
0x28e9   :  { %2177 = vadd.xlane.f32.xlu0 %v2176_v8 }
0x2930   :  { %v2122_v10 = vpop.permute.xlu0 %2121 }
0x2931   :  { %v2124_v12 = vmul.f32 %v2913_v47, %v2122_v10 }
0x2933   :  { %2126 = vrot.lane.b32.xlu1 %v2124_v12, %s3138_s30 }
0x2957   :  { %2165 = vadd.xlane.f32.xlu1 %v2164_v15 }
0x295b   :  { %2174 = vadd.xlane.f32.xlu1 %v2173_v1 }
0x295f   :  { %2180 = vadd.xlane.f32.xlu1 %v2179_v14 }
0x2970   :  { %1133 = vrot.lane.b32.xlu1 %v3522_v37, %s3139_s9 }
0x29a5   :  { %v2127_v41 = vpop.permute.xlu1 %2126 }
0x29a6   :  { %2129 = vst.msk [vmem:[#allocation3 + $0x38] sm:$0xff] %vm288_vm2, %v2127_v41  ;;  %2131 = vst.msk [vmem:[#allocation17 + $0x8] sm:$0xff] %vm288_vm2, %v2127_v41 }
0x29ad   :  { %v2145_v63 = vld [vmem:[#allocation3 + $0x38] sm:$0xff] }
0x29ae   :  { %v2160_v16 = vmul.f32 %v2353_v53, %v2145_v63 }
0x29b0   :  { %v2182_v17 = vsel %vm288_vm2, %v2160_v16, 0.0 }
0x29b1   :  { %2183 = vadd.xlane.f32.xlu0 %v2182_v17 }
0x29b2   :  { %3059 = shalt.err (!%p3056_p10)
}
0x29b3   :  { %s3060_s10 = scalar_lea.hbm %s3692_s12, 256 }
0x29b4   :  { %p3061_p11 = scmp.ne.s32.totalorder %s3692_s12, %s3060_s10  ;;  %p3064_p12 = scmp.lt.u32.totalorder %s3060_s10, %s3692_s12 }
0x29b6   :  { %p3066_p13 = pnand %p3064_p12, %p3061_p11 }
0x29b8   :  { %3069 = shalt.err (!%p3066_p13)
}
0x29b9   :  { %2275 = dma.vmem_to_hbm [thread:$0]  %s2270_s1, 256, %s3692_s12, [#allocation18], %s3128_s21, %s3128_s21, %s3129_s22   ;;  %v2163_v37 = vpop.xlane.xlu0 %2162  ;;  %v2204_v18 = vlaneseq  ;;  %vm2238_vm3 = vcmask 1041409   ;;  %vm2240_vm4 = vcmask 1042434   ;;  %vm2242_vm5 = vcmask 1043459  }
0x29ba   :  { %s2770_s27 = spop %2769  ;;  %vm2244_vm6 = vcmask 1044484   ;;  %vm2246_vm7 = vcmask 1045509   ;;  %vm2248_vm8 = vcmask 1046534   ;;  %s3141_s12 = smov [#allocation19]   ;;  %vm2250_vm9 = vcmask 1047559  }
0x29bb   :  { %v2205_v40 = vand.u32 127, %v2204_v18  ;;  %v2207_v20 = vshrl.u32 %v2204_v18, 7  ;;  %v2187_v21 = vstv %s2770_s27  ;;  %s2281_s6 = sshll.u32 %s3141_s12, 4  ;;  %s3142_s26 = smov [#allocation16]   ;;  %s2282_s6 = int_to_ptr.vmem [resolvable:$true] %s2281_s6 }
0x29bc   :  { %v2188_v24 = vadd.f32 %v2187_v21, %v2163_v37  ;;  %s2260_s7 = sshll.u32 %s3142_s26, 4  ;;  %s3070_s29 = scalar_lea.vmem %s2282_s6, 256  ;;  %s3644_s7 = int_to_ptr.vmem [resolvable:$true] %s2260_s7 }
0x29bd   :  { %v2169_v19 = vpop.xlane.xlu0 %2168  ;;  %v2208_v23 = vsub.s32 %v2205_v40, %v2207_v20  ;;  %p3071_p0 = scmp.ne.s32.totalorder %s2282_s6, %s3070_s29  ;;  %p3075_p1 = scmp.lt.s32.totalorder %s2282_s6, %s2282_s6 }
0x29be   :  { %v2190_v25 = vadd.f32 %v2187_v21, %v2169_v19  ;;  %p3076_p2 = scmp.lt.s32.totalorder %s3070_s29, %s3070_s29 }
0x29bf   :  { %v2209_v29 = vrot.slane %v2188_v24, %v2208_v23 }
0x29c0   :  { %v2217_v31 = vrot.slane %v2190_v25, %v2208_v23  ;;  %p3077_p3 = por %p3076_p2, %p3075_p1 }
0x29c1   :  { %v2172_v22 = vpop.xlane.xlu0 %2171 }
0x29c2   :  { %v2191_v27 = vadd.f32 %v2187_v21, %v2172_v22  ;;  %p3078_p4 = pnand %p3077_p3, %p3071_p0 }
0x29c4   :  { %v2221_v33 = vrot.slane %v2191_v27, %v2208_v23 }
0x29c5   :  { %v2178_v30 = vpop.xlane.xlu0 %2177 }
0x29c6   :  { %v2193_v39 = vadd.f32 %v2187_v21, %v2178_v30 }
0x29c7   :  { %2133 = vrot.lane.b32.xlu0 %v2118_v9, %s3139_s9 }
0x29c8   :  { %v2229_v47 = vrot.slane %v2193_v39, %v2208_v23 }
0x29e4   :  { %v2166_v26 = vpop.xlane.xlu1 %2165 }
0x29e5   :  { %v2189_v28 = vadd.f32 %v2187_v21, %v2166_v26 }
0x29e7   :  { %v2213_v4 = vrot.slane %v2189_v28, %v2208_v23 }
0x29e8   :  { %v2175_v32 = vpop.xlane.xlu1 %2174 }
0x29e9   :  { %v2239_v34 = vsel %vm2238_vm3, %v2213_v4, %v2209_v29  ;;  %v2192_v35 = vadd.f32 %v2187_v21, %v2175_v32 }
0x29ea   :  { %v2241_v38 = vsel %vm2240_vm4, %v2217_v31, %v2239_v34 }
0x29eb   :  { %v2225_v43 = vrot.slane %v2192_v35, %v2208_v23  ;;  %v2243_v0 = vsel %vm2242_vm5, %v2221_v33, %v2241_v38 }
0x29ec   :  { %v2181_v44 = vpop.xlane.xlu1 %2180 }
0x29ed   :  { %v2245_v45 = vsel %vm2244_vm6, %v2225_v43, %v2243_v0  ;;  %v2194_v46 = vadd.f32 %v2187_v21, %v2181_v44 }
0x29ee   :  { %v2247_v50 = vsel %vm2246_vm7, %v2229_v47, %v2245_v45 }
0x29ef   :  { %v2233_v48 = vrot.slane %v2194_v46, %v2208_v23 }
0x29f0   :  { %v1134_v49 = vpop.permute.xlu1 %1133 }
0x29f1   :  { %1136 = vst.msk [vmem:[#allocation19] sm:$0xff] %vm288_vm2, %v1134_v49  ;;  %v2249_v51 = vsel %vm2248_vm8, %v2233_v48, %v2247_v50 }
0x2a3e   :  { %v2184_v9 = vpop.xlane.xlu0 %2183 }
0x2a3f   :  { %v2195_v62 = vadd.f32 %v2187_v21, %v2184_v9 }
0x2a41   :  { %v2237_v36 = vrot.slane %v2195_v62, %v2208_v23 }
0x2a42   :  { %v2134_v52 = vpop.permute.xlu0 %2133 }
0x2a43   :  { %2137 = vst.msk [vmem:[#allocation19 + $0x8] sm:$0xff] %vm288_vm2, %v2134_v52  ;;  %v2251_v53 = vsel %vm2250_vm9, %v2237_v36, %v2249_v51 }
0x2a44   :  { %2253 = vst.msk [vmem:[#allocation16] sm:$0xff] %vm143_vm1, %v2251_v53 }
0x2a45   :  { %3081 = shalt.err (!%p3078_p4)
}
0x2a46   :  { %s3082_s4 = scalar_lea.hbm %s3693_s13, 256 }
0x2a47   :  { %p3083_p5 = scmp.ne.s32.totalorder %s3693_s13, %s3082_s4  ;;  %p3086_p6 = scmp.lt.u32.totalorder %s3082_s4, %s3693_s13 }
0x2a49   :  { %p3088_p7 = pnand %p3086_p6, %p3083_p5 }
0x2a4b   :  { %3091 = shalt.err (!%p3088_p7)
}
0x2a4c   :  { %2287 = dma.vmem_to_hbm [thread:$0]  %s2282_s6, 256, %s3693_s13, [#allocation18], %s3128_s21, %s3128_s21, %s3129_s22  }
0x2a4d   :  { %s3092_s17 = scalar_lea.vmem %s3644_s7, 128  ;;  %p3097_p9 = scmp.lt.s32.totalorder %s3644_s7, %s3644_s7 }
0x2a4e   :  { %p3093_p8 = scmp.ne.s32.totalorder %s3644_s7, %s3092_s17  ;;  %p3098_p10 = scmp.lt.s32.totalorder %s3092_s17, %s3092_s17 }
0x2a50   :  { %p3099_p11 = por %p3098_p10, %p3097_p9 }
0x2a52   :  { %p3100_p12 = pnand %p3099_p11, %p3093_p8 }
0x2a54   :  { %3103 = shalt.err (!%p3100_p12)
}
0x2a55   :  { %s3104_s20 = scalar_lea.hbm %s3691_s11, 128 }
0x2a56   :  { %p3105_p13 = scmp.ne.s32.totalorder %s3691_s11, %s3104_s20  ;;  %p3108_p0 = scmp.lt.u32.totalorder %s3104_s20, %s3691_s11 }
0x2a58   :  { %p3110_p1 = pnand %p3108_p0, %p3105_p13 }
0x2a5a   :  { %3113 = shalt.err (!%p3110_p1)
}
0x2a5b   :  { %2263 = dma.vmem_to_hbm [thread:$0]  %s3644_s7, 128, %s3691_s11, [#allocation7]  }
0x2a5c   :  { %3122 = dma.done.wait [#allocation7], 128  }
0x2a5d   :  { %3123 = vsyncadd [#allocation7], 4294967168 }
0x2a5e   :  { %3124 = dma.done.wait [#allocation18], 512  }
0x2a5f   :  { %3125 = vsyncadd [#allocation18], 4294966784 }
0x2a60   :  { %2297 = vsyncpa [#allocation6], 1 }
0x2a61   :  { %2298 = vsyncpa [#allocation9], 1 }
0x2a62   :  { %2299 = vsyncpa [#allocation12], 1 }
0x2a63   :  { %2300 = vsyncpa [#allocation15], 1 }
0x2a64   :  { %2301 = vsyncpa [#allocation7], 1 }
0x2a65   :  { %2302 = vsyncpa [#allocation18], 1 }

</bundles_post_ra>
